<compile_context>
chip_gen: v7x
topology: tpu7x:2x2x1
jax: 0.10.0
libtpu: 0.0.40
codegen_flags: <defaults>
</compile_context>

<pallas_src>
import functools

import jax
import jax.numpy as jnp
from jax.experimental import pallas as pl
from jax.experimental.pallas import tpu as pltpu

# ----------------------------- config (cfg analog) -----------------------------
DOWN_RATIO = 4          # cfg.commen.down_ratio
NUM_CLASSES = 4         # cfg.model.heads['act_hm']
HEAD_CONV = 32          # cfg.model.head_conv
K_DET = 8               # detections kept by decode
N_PTS = 16              # polygon points (small synthetic)
EVOLVE_ITERS = 2        # cfg.model.evolve_iters
EVOLVE_STRIDE = 4.0     # cfg.model.evolve_stride
BACKBONE_C1 = 8
FEAT_C = 16             # cnn_feature channels


def _round_up(x, m):
    return (x + m - 1) // m * m


# ----------------------------- Pallas kernels ----------------------------------
def _mm_bias_kernel(x_ref, w_ref, b_ref, o_ref, *, relu):
    # bf16 MXU matmul, f32 accumulate, f32 bias/ReLU epilogue (v5e-safe).
    acc = jnp.dot(x_ref[...], w_ref[...], preferred_element_type=jnp.float32)
    acc = acc + b_ref[...]
    if relu:
        acc = jnp.maximum(acc, 0.0)
    o_ref[...] = acc.astype(o_ref.dtype)


def pallas_matmul_bias(x, w, b, relu=False, tm=512):
    """(M,K) @ (K,N) + b, optionally ReLU, on the MXU.

    M is tiled (double-buffered pipeline, 'parallel' for megacore), N is padded
    to a multiple of 128 for lane-dense output stores, inputs fed as bf16.
    """
    M, K = x.shape
    Kw, N = w.shape
    assert K == Kw
    Np = _round_up(N, 128)
    # Cap the M tile so double-buffered blocks stay well under v7x scoped VMEM.
    while tm > 64 and 2 * (tm * K * 2 + tm * Np * 4) > (12 << 20):
        tm //= 2
    Mp = _round_up(M, 8)
    TM = min(tm, Mp)
    Mp = _round_up(Mp, TM)
    if Mp != M:
        x = jnp.pad(x, ((0, Mp - M), (0, 0)))
    if Np != N:
        w = jnp.pad(w, ((0, 0), (0, Np - N)))
        b = jnp.pad(b, ((0, Np - N),))
    out = pl.pallas_call(
        functools.partial(_mm_bias_kernel, relu=relu),
        out_shape=jax.ShapeDtypeStruct((Mp, Np), jnp.float32),
        grid=(Mp // TM,),
        in_specs=[
            pl.BlockSpec((TM, K), lambda i: (i, 0)),   # activations: tiled over M
            pl.BlockSpec((K, Np), lambda i: (0, 0)),   # weights: resident
            pl.BlockSpec((1, Np), lambda i: (0, 0)),   # bias: resident
        ],
        out_specs=pl.BlockSpec((TM, Np), lambda i: (i, 0)),
        compiler_params=pltpu.CompilerParams(dimension_semantics=("parallel",)),
    )(x.astype(jnp.bfloat16), w.astype(jnp.bfloat16),
      b.reshape(1, Np).astype(jnp.float32))
    return out[:M, :N]


def _heads_kernel(x_ref, w1_ref, b1_ref, f1_ref, w2_ref, b2_ref, o_ref):
    # Fused detection heads: (im2col cols) @ W1 + b1, per-column activation
    # floor (0 -> ReLU, -1e30 -> passthrough for cp), then @ W2 + b2.
    h = jnp.dot(x_ref[...], w1_ref[...], preferred_element_type=jnp.float32)
    h = jnp.maximum(h + b1_ref[...], f1_ref[...])
    o = jnp.dot(h.astype(jnp.bfloat16), w2_ref[...],
                preferred_element_type=jnp.float32)
    o_ref[...] = (o + b2_ref[...]).astype(o_ref.dtype)


def pallas_fused_heads(cols, w1, b1, floor1, w2, b2, tm=512):
    """Two chained MXU matmuls; hidden layer never leaves VMEM."""
    M, K = cols.shape
    H1p = w1.shape[1]
    N2p = w2.shape[1]
    Mp = _round_up(M, 8)
    TM = min(tm, Mp)
    while TM > 64 and 2 * (TM * K * 2 + TM * H1p * 4 + TM * N2p * 4) > (12 << 20):
        TM //= 2
    Mp = _round_up(Mp, TM)
    if Mp != M:
        cols = jnp.pad(cols, ((0, Mp - M), (0, 0)))
    out = pl.pallas_call(
        _heads_kernel,
        out_shape=jax.ShapeDtypeStruct((Mp, N2p), jnp.float32),
        grid=(Mp // TM,),
        in_specs=[
            pl.BlockSpec((TM, K), lambda i: (i, 0)),    # cols: tiled over M
            pl.BlockSpec((K, H1p), lambda i: (0, 0)),   # resident weights / vecs
            pl.BlockSpec((1, H1p), lambda i: (0, 0)),
            pl.BlockSpec((1, H1p), lambda i: (0, 0)),
            pl.BlockSpec((H1p, N2p), lambda i: (0, 0)),
            pl.BlockSpec((1, N2p), lambda i: (0, 0)),
        ],
        out_specs=pl.BlockSpec((TM, N2p), lambda i: (i, 0)),
        compiler_params=pltpu.CompilerParams(dimension_semantics=("parallel",)),
    )(cols.astype(jnp.bfloat16), w1.astype(jnp.bfloat16),
      b1.reshape(1, H1p).astype(jnp.float32),
      floor1.reshape(1, H1p).astype(jnp.float32),
      w2.astype(jnp.bfloat16), b2.reshape(1, N2p).astype(jnp.float32))
    return out[:M]


def _evolve_mlp_kernel(x_ref, w1_ref, b1_ref, w2_ref, b2_ref, o_ref, *, stride):
    # Fused fc1 + ReLU + fc2 + stride*tanh; hidden stays on-chip (no HBM trip).
    h = jnp.dot(x_ref[...], w1_ref[...], preferred_element_type=jnp.float32)
    h = jnp.maximum(h + b1_ref[...], 0.0)
    o = jnp.dot(h.astype(jnp.bfloat16), w2_ref[...],
                preferred_element_type=jnp.float32)
    o_ref[...] = stride * jnp.tanh(o + b2_ref[...])


def pallas_evolve_mlp(x, w1, b1, w2, b2, stride=EVOLVE_STRIDE, tm=512):
    """Fused 2-layer point MLP: stride*tanh(relu(x@w1+b1)@w2+b2)."""
    M, K1 = x.shape
    H1 = w1.shape[1]
    N2 = w2.shape[1]
    N2p = _round_up(N2, 128)
    Mp = _round_up(M, 8)
    TM = min(tm, Mp)
    Mp = _round_up(Mp, TM)
    if Mp != M:
        x = jnp.pad(x, ((0, Mp - M), (0, 0)))
    w2p = jnp.pad(w2, ((0, 0), (0, N2p - N2)))
    b2p = jnp.pad(b2, ((0, N2p - N2),))
    out = pl.pallas_call(
        functools.partial(_evolve_mlp_kernel, stride=stride),
        out_shape=jax.ShapeDtypeStruct((Mp, N2p), jnp.float32),
        grid=(Mp // TM,),
        in_specs=[
            pl.BlockSpec((TM, K1), lambda i: (i, 0)),
            pl.BlockSpec((K1, H1), lambda i: (0, 0)),
            pl.BlockSpec((1, H1), lambda i: (0, 0)),
            pl.BlockSpec((H1, N2p), lambda i: (0, 0)),
            pl.BlockSpec((1, N2p), lambda i: (0, 0)),
        ],
        out_specs=pl.BlockSpec((TM, N2p), lambda i: (i, 0)),
        compiler_params=pltpu.CompilerParams(dimension_semantics=("parallel",)),
    )(x.astype(jnp.bfloat16), w1.astype(jnp.bfloat16),
      b1.reshape(1, H1).astype(jnp.float32),
      w2p.astype(jnp.bfloat16), b2p.reshape(1, N2p).astype(jnp.float32))
    return out[:M, :N2]


def _nms_sigmoid_kernel(hm_ref, o_ref):
    # Stable sigmoid (tanh form -> EUP) + separable 3x3 max-pool "keep peaks".
    x = hm_ref[...]                                    # (BC, Hp, Wp), logits
    s = 0.5 * (jnp.tanh(0.5 * x) + 1.0)                # sigmoid, pad(-1e30) -> 0
    rm = jnp.maximum(s, jnp.maximum(jnp.roll(s, 1, axis=2),
                                    jnp.roll(s, -1, axis=2)))
    m = jnp.maximum(rm, jnp.maximum(jnp.roll(rm, 1, axis=1),
                                    jnp.roll(rm, -1, axis=1)))
    # Roll wrap-around lands on padded (~0) rows/cols; sigmoid of real pixels is
    # >= 0, so padding never wins the max -> matches zero-padded maxpool.
    o_ref[...] = jnp.where(s >= m, s, 0.0)


def pallas_sigmoid_nms(hm_nchw):
    """sigmoid + 3x3 max-pool NMS on a lane-dense (B*C, Hp, Wp>=128) layout."""
    B, C, H, W = hm_nchw.shape
    Hp = _round_up(H + 1, 8)            # >= H+1 so roll wrap hits padding
    Wp = _round_up(max(W + 1, 128), 128)
    x = hm_nchw.reshape(B * C, H, W)
    x = jnp.pad(x, ((0, 0), (0, Hp - H), (0, Wp - W)), constant_values=-1e30)
    out = pl.pallas_call(
        _nms_sigmoid_kernel,
        out_shape=jax.ShapeDtypeStruct((B * C, Hp, Wp), jnp.float32),
        grid=(1,),
        in_specs=[pl.BlockSpec((B * C, Hp, Wp), lambda i: (0, 0, 0))],
        out_specs=pl.BlockSpec((B * C, Hp, Wp), lambda i: (0, 0, 0)),
        compiler_params=pltpu.CompilerParams(dimension_semantics=("arbitrary",)),
    )(x.astype(jnp.float32))
    return out[:, :H, :W].reshape(B, C, H, W)


# ----------------------------- conv via im2col + Pallas matmul -----------------
def im2col(x_nhwc, kh, kw, stride=1, pad=0):
    # TODO(synk): im2col is still JAX glue (9x activation expansion for 3x3);
    # fully in-kernel im2col needs halo'd/overlapping blocks (manual DMA).
    B, H, W, C = x_nhwc.shape
    Ho = (H + 2 * pad - kh) // stride + 1
    Wo = (W + 2 * pad - kw) // stride + 1
    if kh == 1 and kw == 1 and stride == 1 and pad == 0:
        return x_nhwc.reshape(B * H * W, C), Ho, Wo
    xp = jnp.pad(x_nhwc, ((0, 0), (pad, pad), (pad, pad), (0, 0)))
    parts = []
    for i in range(kh):
        for j in range(kw):
            parts.append(
                xp[:, i:i + stride * Ho:stride, j:j + stride * Wo:stride, :])
    cols = jnp.concatenate(parts, axis=-1).reshape(B * Ho * Wo, kh * kw * C)
    return cols, Ho, Wo


def conv2d(x_nhwc, w, b, stride=1, pad=0, relu=False):
    """w: (kh, kw, Cin, Cout); x: NHWC."""
    B = x_nhwc.shape[0]
    kh, kw, Cin, Cout = w.shape
    assert x_nhwc.shape[-1] == Cin
    cols, Ho, Wo = im2col(x_nhwc, kh, kw, stride=stride, pad=pad)
    out = pallas_matmul_bias(cols, w.reshape(kh * kw * Cin, Cout), b, relu=relu)
    return out.reshape(B, Ho, Wo, Cout)


# ----------------------------- params ------------------------------------------
def init_params(key):
    def dense(k, shape, scale=0.1):
        return scale * jax.random.normal(k, shape, jnp.float32)

    ks = jax.random.split(key, 12)
    p = {}
    # DLA-style backbone (simplified, down_ratio = 4)
    p['bb1_w'] = dense(ks[0], (3, 3, 3, BACKBONE_C1)); p['bb1_b'] = jnp.zeros((BACKBONE_C1,))
    p['bb2_w'] = dense(ks[1], (3, 3, BACKBONE_C1, FEAT_C)); p['bb2_b'] = jnp.zeros((FEAT_C,))
    # heads: act_hm, awh  (3x3 head_conv + ReLU, then 1x1)
    p['hm1_w'] = dense(ks[2], (3, 3, FEAT_C, HEAD_CONV)); p['hm1_b'] = jnp.zeros((HEAD_CONV,))
    p['hm2_w'] = dense(ks[3], (1, 1, HEAD_CONV, NUM_CLASSES)); p['hm2_b'] = jnp.full((NUM_CLASSES,), -2.19)
    p['wh1_w'] = dense(ks[4], (3, 3, FEAT_C, HEAD_CONV)); p['wh1_b'] = jnp.zeros((HEAD_CONV,))
    p['wh2_w'] = dense(ks[5], (1, 1, HEAD_CONV, 2)); p['wh2_b'] = jnp.zeros((2,))
    # ComponentDetection heads (simplified)
    p['cp_hm_w'] = dense(ks[6], (1, 1, FEAT_C, 1)); p['cp_hm_b'] = jnp.full((1,), -2.19)
    p['cp_wh_w'] = dense(ks[7], (1, 1, FEAT_C, 2)); p['cp_wh_b'] = jnp.zeros((2,))
    # RAFT evolution MLP (simplified)
    p['ev1_w'] = dense(ks[8], (FEAT_C + 2, HEAD_CONV)); p['ev1_b'] = jnp.zeros((HEAD_CONV,))
    p['ev2_w'] = dense(ks[9], (HEAD_CONV, 2)); p['ev2_b'] = jnp.zeros((2,))
    return p


# ----------------------------- fused-head weight assembly -----------------------
def _build_head_weights(params):
    """Pack act_hm/awh (3x3->1x1) and cp_hm/cp_wh (1x1) heads into one 2-matmul
    pipeline.  cp 1x1 weights occupy the centre-tap rows of the 3x3 im2col and
    are routed straight to the output by identity rows in W2 (no ReLU via a
    per-column activation floor)."""
    Cin = FEAT_C
    K = 9 * Cin
    H1 = 2 * HEAD_CONV + 3
    H1p = _round_up(H1, 128)
    N2 = NUM_CLASSES + 2 + 3                      # [act_hm, awh, cp_hm, cp_wh]
    N2p = _round_up(N2, 128)

    w1 = jnp.zeros((K, H1p), jnp.float32)
    w1 = w1.at[:, :HEAD_CONV].set(params['hm1_w'].reshape(K, HEAD_CONV))
    w1 = w1.at[:, HEAD_CONV:2 * HEAD_CONV].set(params['wh1_w'].reshape(K, HEAD_CONV))
    ctr = 4 * Cin                                 # centre tap of the 3x3 im2col
    w1 = w1.at[ctr:ctr + Cin, 2 * HEAD_CONV:2 * HEAD_CONV + 1].set(params['cp_hm_w'][0, 0])
    w1 = w1.at[ctr:ctr + Cin, 2 * HEAD_CONV + 1:2 * HEAD_CONV + 3].set(params['cp_wh_w'][0, 0])

    b1 = jnp.zeros((H1p,), jnp.float32)
    b1 = b1.at[:HEAD_CONV].set(params['hm1_b'])
    b1 = b1.at[HEAD_CONV:2 * HEAD_CONV].set(params['wh1_b'])
    b1 = b1.at[2 * HEAD_CONV:2 * HEAD_CONV + 1].set(params['cp_hm_b'])
    b1 = b1.at[2 * HEAD_CONV + 1:2 * HEAD_CONV + 3].set(params['cp_wh_b'])

    # per-column activation floor: 0.0 -> ReLU (head convs), -1e30 -> passthrough
    floor1 = jnp.full((H1p,), -1e30, jnp.float32)
    floor1 = floor1.at[:2 * HEAD_CONV].set(0.0)
    floor1 = floor1.at[H1:].set(0.0)              # pad columns stay exactly 0

    w2 = jnp.zeros((H1p, N2p), jnp.float32)
    w2 = w2.at[:HEAD_CONV, :NUM_CLASSES].set(params['hm2_w'][0, 0])
    w2 = w2.at[HEAD_CONV:2 * HEAD_CONV, NUM_CLASSES:NUM_CLASSES + 2].set(params['wh2_w'][0, 0])
    for i in range(3):                            # identity passthrough for cp
        w2 = w2.at[2 * HEAD_CONV + i, NUM_CLASSES + 2 + i].set(1.0)

    b2 = jnp.zeros((N2p,), jnp.float32)
    b2 = b2.at[:NUM_CLASSES].set(params['hm2_b'])
    b2 = b2.at[NUM_CLASSES:NUM_CLASSES + 2].set(params['wh2_b'])
    return w1, b1, floor1, w2, b2


# ----------------------------- sub-modules --------------------------------------
def dla_forward(params, x_nchw):
    # TODO(synk): full DLASeg (deep aggregation + IDAUp) source not provided;
    # replaced with a 2-stage strided backbone giving the same down_ratio=4 feature.
    x = jnp.transpose(x_nchw, (0, 2, 3, 1))                       # NCHW -> NHWC
    f = conv2d(x, params['bb1_w'], params['bb1_b'], stride=2, pad=1, relu=True)
    f = conv2d(f, params['bb2_w'], params['bb2_b'], stride=2, pad=1, relu=True)

    # All dense heads in one fused Pallas kernel (single im2col of f).
    B, H, W, _ = f.shape
    cols, Ho, Wo = im2col(f, 3, 3, stride=1, pad=1)
    w1, b1, floor1, w2, b2 = _build_head_weights(params)
    heads = pallas_fused_heads(cols, w1, b1, floor1, w2, b2)      # (B*H*W, 128)
    heads = heads.reshape(B, Ho, Wo, -1)

    hm_nhwc = heads[..., :NUM_CLASSES]
    wh_nhwc = heads[..., NUM_CLASSES:NUM_CLASSES + 2]
    cp_nhwc = heads[..., NUM_CLASSES + 2:NUM_CLASSES + 5]
    output = {'act_hm': jnp.transpose(hm_nhwc, (0, 3, 1, 2)),     # NCHW like torch
              'awh': jnp.transpose(wh_nhwc, (0, 3, 1, 2))}
    return output, f, wh_nhwc, cp_nhwc                            # NHWC internals


def decode_detection(output, wh_nhwc, h, w):
    ct_hm = output['act_hm']                                      # (B, C, H, W)
    nms_hm = pallas_sigmoid_nms(ct_hm)                            # Pallas kernel
    B, C, Hh, Wh = ct_hm.shape
    flat = nms_hm.reshape(B, C * Hh * Wh)
    scores, inds = jax.lax.top_k(flat, K_DET)
    clses = (inds // (Hh * Wh)).astype(jnp.float32)
    spatial = inds % (Hh * Wh)
    ys = (spatial // Wh).astype(jnp.float32)
    xs = (spatial % Wh).astype(jnp.float32)
    wh_t = wh_nhwc.reshape(B, Hh * Wh, 2)                         # no extra transpose
    gidx = jnp.broadcast_to(spatial[..., None], (B, K_DET, 2))
    wh_g = jnp.take_along_axis(wh_t, gidx, axis=1)                # (B, K, 2)
    x1 = xs - wh_g[..., 0] / 2.0
    y1 = ys - wh_g[..., 1] / 2.0
    x2 = xs + wh_g[..., 0] / 2.0
    y2 = ys + wh_g[..., 1] / 2.0
    # clip_to_image
    x1 = jnp.clip(x1, 0.0, w - 1.0); x2 = jnp.clip(x2, 0.0, w - 1.0)
    y1 = jnp.clip(y1, 0.0, h - 1.0); y2 = jnp.clip(y2, 0.0, h - 1.0)
    ct = jnp.stack([xs, ys], axis=2)                              # (B, K, 2)
    detection = jnp.stack([x1, y1, x2, y2, scores, clses], axis=2)  # (B, K, 6)
    output = dict(output)
    output['ct'] = ct
    output['detection'] = detection
    return output


def cp_forward(output, cp_nhwc):
    # TODO(synk): ComponentDetection (RoI-based component head) source not provided;
    # implemented as dense 1x1 component heatmap / wh heads fused into the head kernel.
    output = dict(output)
    output['cp_hm'] = jnp.transpose(cp_nhwc[..., :1], (0, 3, 1, 2))
    output['cp_wh'] = jnp.transpose(cp_nhwc[..., 1:], (0, 3, 1, 2))
    return output


def _init_polys(detection):
    x1, y1, x2, y2 = (detection[..., 0], detection[..., 1],
                      detection[..., 2], detection[..., 3])
    cx, cy = (x1 + x2) / 2.0, (y1 + y2) / 2.0
    rx, ry = (x2 - x1) / 2.0, (y2 - y1) / 2.0
    t = jnp.arange(N_PTS, dtype=jnp.float32) / N_PTS * 2.0 * jnp.pi
    px = cx[..., None] + rx[..., None] * jnp.cos(t)
    py = cy[..., None] + ry[..., None] * jnp.sin(t)
    return jnp.stack([px, py], axis=-1)                           # (B, K, N, 2)


def _sample_features(feat_nhwc, pts):
    # nearest-neighbour feature sampling (gather glue)
    B, H, W, C = feat_nhwc.shape
    xi = jnp.clip(jnp.round(pts[..., 0]), 0, W - 1).astype(jnp.int32)
    yi = jnp.clip(jnp.round(pts[..., 1]), 0, H - 1).astype(jnp.int32)
    idx = (yi * W + xi).reshape(B, -1)                            # (B, K*N)
    flat = feat_nhwc.reshape(B, H * W, C)
    gidx = jnp.broadcast_to(idx[..., None], (B, idx.shape[1], C))
    g = jnp.take_along_axis(flat, gidx, axis=1)
    return g.reshape(B, pts.shape[1], pts.shape[2], C)


def raft_forward(params, output, cnn_feature):
    # TODO(synk): RAFT snake-evolution (circular-conv GRU) source not provided;
    # implemented as evolve_iter_num steps of point-feature MLP offset regression;
    # the whole MLP (fc1+ReLU+fc2+tanh*stride) runs in one fused Pallas kernel.
    detection = output['detection']
    B, H, W, C = cnn_feature.shape
    poly_init = _init_polys(detection)
    pts = poly_init
    pys = []
    for _ in range(EVOLVE_ITERS):
        feats = _sample_features(cnn_feature, pts)                # (B, K, N, C)
        norm_pts = pts / jnp.array([W, H], jnp.float32)
        inp = jnp.concatenate([feats, norm_pts], axis=-1)         # (B, K, N, C+2)
        M = B * K_DET * N_PTS
        delta = pallas_evolve_mlp(inp.reshape(M, C + 2),
                                  params['ev1_w'], params['ev1_b'],
                                  params['ev2_w'], params['ev2_b'])
        pts = pts + delta.reshape(B, K_DET, N_PTS, 2)
        pys.append(pts)
    output = dict(output)
    output['poly_init'] = poly_init
    output['py_pred'] = pys[-1]
    output['py'] = pys
    return output


# ----------------------------- Network.forward ----------------------------------
def network_forward(params, x_nchw):
    output, cnn_feature, wh_nhwc, cp_nhwc = dla_forward(params, x_nchw)
    # torch.no_grad() analog: decode detections without gradient flow
    h, w = cnn_feature.shape[1], cnn_feature.shape[2]             # NHWC -> H, W
    output = decode_detection(output, wh_nhwc, float(h), float(w))
    output['ct'] = jax.lax.stop_gradient(output['ct'])
    output['detection'] = jax.lax.stop_gradient(output['detection'])
    output = cp_forward(output, cp_nhwc)
    output = raft_forward(params, output, cnn_feature)
    return output


if __name__ == "__main__":
    key = jax.random.PRNGKey(0)
    kp, kx = jax.random.split(key)
    params = init_params(kp)
    x = jax.random.normal(kx, (2, 3, 32, 32), jnp.float32)        # NCHW input
    fwd = jax.jit(functools.partial(network_forward, params))
    out = fwd(x)
    jax.block_until_ready(out)
    assert out['detection'].shape == (2, K_DET, 6)
    assert out['act_hm'].shape == (2, NUM_CLASSES, 8, 8)
    assert out['cp_hm'].shape == (2, 1, 8, 8)
    assert out['py_pred'].shape == (2, K_DET, N_PTS, 2)
    print("KERNEL_OK")
</pallas_src>

<mosaic_0001>
module attributes {stable_mosaic.version = 11 : i64} {
  func.func @_mm_bias_kernel(%arg0: i32, %arg1: memref<512x27xbf16, #tpu.memory_space<vmem>>, %arg2: memref<27x128xbf16, #tpu.memory_space<vmem>>, %arg3: memref<1x128xf32, #tpu.memory_space<vmem>>, %arg4: memref<512x128xf32, #tpu.memory_space<vmem>>) attributes {dimension_semantics = [#tpu.dimension_semantics<parallel>], iteration_bounds = array<i64: 1>, scalar_prefetch = 0 : i64, scratch_operands = 0 : i64, tpu.core_type = #tpu.core_type<tc>, window_params = [{transform_indices = @transform_0, window_bounds = array<i64: 512, 27>}, {pipeline_mode = #tpu.pipeline_mode<synchronous>, transform_indices = @transform_1, window_bounds = array<i64: 27, 128>}, {pipeline_mode = #tpu.pipeline_mode<synchronous>, transform_indices = @transform_2, window_bounds = array<i64: 1, 128>}, {transform_indices = @transform_3, window_bounds = array<i64: 512, 128>}]} {
    %c0 = arith.constant 0 : index
    %c0_0 = arith.constant 0 : index
    %0 = vector.load %arg1[%c0, %c0_0] : memref<512x27xbf16, #tpu.memory_space<vmem>>, vector<512x27xbf16>
    %c0_1 = arith.constant 0 : index
    %c0_2 = arith.constant 0 : index
    %1 = vector.load %arg2[%c0_1, %c0_2] : memref<27x128xbf16, #tpu.memory_space<vmem>>, vector<27x128xbf16>
    %cst = arith.constant dense<0.000000e+00> : vector<512x128xf32>
    %2 = tpu.matmul %0, %1, %cst {dimension_numbers = #tpu.dot_dimension_numbers<[1], [0], [0], [1], [0, 0, 1, 1], [], []>} : vector<512x27xbf16>, vector<27x128xbf16>, vector<512x128xf32> -> vector<512x128xf32>
    %c0_3 = arith.constant 0 : index
    %c0_4 = arith.constant 0 : index
    %3 = vector.load %arg3[%c0_3, %c0_4] : memref<1x128xf32, #tpu.memory_space<vmem>>, vector<1x128xf32>
    %4 = vector.broadcast %3 : vector<1x128xf32> to vector<512x128xf32>
    %5 = arith.addf %2, %4 : vector<512x128xf32>
    %cst_5 = arith.constant 0.000000e+00 : f32
    %6 = vector.broadcast %cst_5 : f32 to vector<512x128xf32>
    %7 = arith.maximumf %5, %6 : vector<512x128xf32>
    %c0_6 = arith.constant 0 : index
    %c0_7 = arith.constant 0 : index
    %8 = vector.load %arg4[%c0_6, %c0_7] : memref<512x128xf32, #tpu.memory_space<vmem>>, vector<512x128xf32>
    tpu.vector_store %arg4[%c0_6, %c0_7], %7 {strides = array<i32>} : memref<512x128xf32, #tpu.memory_space<vmem>>, vector<512x128xf32>,
    return
  }
  func.func @transform_0(%arg0: i32) -> (i32, i32) {
    %c0_i32 = arith.constant 0 : i32
    %c0_i32_0 = arith.constant 0 : i32
    return %arg0, %c0_i32 : i32, i32
  }
  func.func @transform_1(%arg0: i32) -> (i32, i32) {
    %c0_i32 = arith.constant 0 : i32
    %c0_i32_0 = arith.constant 0 : i32
    %c0_i32_1 = arith.constant 0 : i32
    return %c0_i32, %c0_i32_0 : i32, i32
  }
  func.func @transform_2(%arg0: i32) -> (i32, i32) {
    %c0_i32 = arith.constant 0 : i32
    %c0_i32_0 = arith.constant 0 : i32
    %c0_i32_1 = arith.constant 0 : i32
    return %c0_i32, %c0_i32_0 : i32, i32
  }
  func.func @transform_3(%arg0: i32) -> (i32, i32) {
    %c0_i32 = arith.constant 0 : i32
    %c0_i32_0 = arith.constant 0 : i32
    return %arg0, %c0_i32 : i32, i32
  }
}

module attributes {stable_mosaic.version = 11 : i64} {
  func.func @_mm_bias_kernel(%arg0: i32, %arg1: memref<128x72xbf16, #tpu.memory_space<vmem>>, %arg2: memref<72x128xbf16, #tpu.memory_space<vmem>>, %arg3: memref<1x128xf32, #tpu.memory_space<vmem>>, %arg4: memref<128x128xf32, #tpu.memory_space<vmem>>) attributes {dimension_semantics = [#tpu.dimension_semantics<parallel>], iteration_bounds = array<i64: 1>, scalar_prefetch = 0 : i64, scratch_operands = 0 : i64, tpu.core_type = #tpu.core_type<tc>, window_params = [{transform_indices = @transform_0, window_bounds = array<i64: 128, 72>}, {pipeline_mode = #tpu.pipeline_mode<synchronous>, transform_indices = @transform_1, window_bounds = array<i64: 72, 128>}, {pipeline_mode = #tpu.pipeline_mode<synchronous>, transform_indices = @transform_2, window_bounds = array<i64: 1, 128>}, {transform_indices = @transform_3, window_bounds = array<i64: 128, 128>}]} {
    %c0 = arith.constant 0 : index
    %c0_0 = arith.constant 0 : index
    %0 = vector.load %arg1[%c0, %c0_0] : memref<128x72xbf16, #tpu.memory_space<vmem>>, vector<128x72xbf16>
    %c0_1 = arith.constant 0 : index
    %c0_2 = arith.constant 0 : index
    %1 = vector.load %arg2[%c0_1, %c0_2] : memref<72x128xbf16, #tpu.memory_space<vmem>>, vector<72x128xbf16>
    %cst = arith.constant dense<0.000000e+00> : vector<128x128xf32>
    %2 = tpu.matmul %0, %1, %cst {dimension_numbers = #tpu.dot_dimension_numbers<[1], [0], [0], [1], [0, 0, 1, 1], [], []>} : vector<128x72xbf16>, vector<72x128xbf16>, vector<128x128xf32> -> vector<128x128xf32>
    %c0_3 = arith.constant 0 : index
    %c0_4 = arith.constant 0 : index
    %3 = vector.load %arg3[%c0_3, %c0_4] : memref<1x128xf32, #tpu.memory_space<vmem>>, vector<1x128xf32>
    %4 = vector.broadcast %3 : vector<1x128xf32> to vector<128x128xf32>
    %5 = arith.addf %2, %4 : vector<128x128xf32>
    %cst_5 = arith.constant 0.000000e+00 : f32
    %6 = vector.broadcast %cst_5 : f32 to vector<128x128xf32>
    %7 = arith.maximumf %5, %6 : vector<128x128xf32>
    %c0_6 = arith.constant 0 : index
    %c0_7 = arith.constant 0 : index
    %8 = vector.load %arg4[%c0_6, %c0_7] : memref<128x128xf32, #tpu.memory_space<vmem>>, vector<128x128xf32>
    tpu.vector_store %arg4[%c0_6, %c0_7], %7 {strides = array<i32>} : memref<128x128xf32, #tpu.memory_space<vmem>>, vector<128x128xf32>,
    return
  }
  func.func @transform_0(%arg0: i32) -> (i32, i32) {
    %c0_i32 = arith.constant 0 : i32
    %c0_i32_0 = arith.constant 0 : i32
    return %arg0, %c0_i32 : i32, i32
  }
  func.func @transform_1(%arg0: i32) -> (i32, i32) {
    %c0_i32 = arith.constant 0 : i32
    %c0_i32_0 = arith.constant 0 : i32
    %c0_i32_1 = arith.constant 0 : i32
    return %c0_i32, %c0_i32_0 : i32, i32
  }
  func.func @transform_2(%arg0: i32) -> (i32, i32) {
    %c0_i32 = arith.constant 0 : i32
    %c0_i32_0 = arith.constant 0 : i32
    %c0_i32_1 = arith.constant 0 : i32
    return %c0_i32, %c0_i32_0 : i32, i32
  }
  func.func @transform_3(%arg0: i32) -> (i32, i32) {
    %c0_i32 = arith.constant 0 : i32
    %c0_i32_0 = arith.constant 0 : i32
    return %arg0, %c0_i32 : i32, i32
  }
}

module attributes {stable_mosaic.version = 11 : i64} {
  func.func @_heads_kernel(%arg0: i32, %arg1: memref<128x144xbf16, #tpu.memory_space<vmem>>, %arg2: memref<144x128xbf16, #tpu.memory_space<vmem>>, %arg3: memref<1x128xf32, #tpu.memory_space<vmem>>, %arg4: memref<1x128xf32, #tpu.memory_space<vmem>>, %arg5: memref<128x128xbf16, #tpu.memory_space<vmem>>, %arg6: memref<1x128xf32, #tpu.memory_space<vmem>>, %arg7: memref<128x128xf32, #tpu.memory_space<vmem>>) attributes {dimension_semantics = [#tpu.dimension_semantics<parallel>], iteration_bounds = array<i64: 1>, scalar_prefetch = 0 : i64, scratch_operands = 0 : i64, tpu.core_type = #tpu.core_type<tc>, window_params = [{transform_indices = @transform_0, window_bounds = array<i64: 128, 144>}, {pipeline_mode = #tpu.pipeline_mode<synchronous>, transform_indices = @transform_1, window_bounds = array<i64: 144, 128>}, {pipeline_mode = #tpu.pipeline_mode<synchronous>, transform_indices = @transform_2, window_bounds = array<i64: 1, 128>}, {pipeline_mode = #tpu.pipeline_mode<synchronous>, transform_indices = @transform_3, window_bounds = array<i64: 1, 128>}, {pipeline_mode = #tpu.pipeline_mode<synchronous>, transform_indices = @transform_4, window_bounds = array<i64: 128, 128>}, {pipeline_mode = #tpu.pipeline_mode<synchronous>, transform_indices = @transform_5, window_bounds = array<i64: 1, 128>}, {transform_indices = @transform_6, window_bounds = array<i64: 128, 128>}]} {
    %c0 = arith.constant 0 : index
    %c0_0 = arith.constant 0 : index
    %0 = vector.load %arg1[%c0, %c0_0] : memref<128x144xbf16, #tpu.memory_space<vmem>>, vector<128x144xbf16>
    %c0_1 = arith.constant 0 : index
    %c0_2 = arith.constant 0 : index
    %1 = vector.load %arg2[%c0_1, %c0_2] : memref<144x128xbf16, #tpu.memory_space<vmem>>, vector<144x128xbf16>
    %cst = arith.constant dense<0.000000e+00> : vector<128x128xf32>
    %2 = tpu.matmul %0, %1, %cst {dimension_numbers = #tpu.dot_dimension_numbers<[1], [0], [0], [1], [0, 0, 1, 1], [], []>} : vector<128x144xbf16>, vector<144x128xbf16>, vector<128x128xf32> -> vector<128x128xf32>
    %c0_3 = arith.constant 0 : index
    %c0_4 = arith.constant 0 : index
    %3 = vector.load %arg3[%c0_3, %c0_4] : memref<1x128xf32, #tpu.memory_space<vmem>>, vector<1x128xf32>
    %4 = vector.broadcast %3 : vector<1x128xf32> to vector<128x128xf32>
    %5 = arith.addf %2, %4 : vector<128x128xf32>
    %c0_5 = arith.constant 0 : index
    %c0_6 = arith.constant 0 : index
    %6 = vector.load %arg4[%c0_5, %c0_6] : memref<1x128xf32, #tpu.memory_space<vmem>>, vector<1x128xf32>
    %7 = vector.broadcast %6 : vector<1x128xf32> to vector<128x128xf32>
    %8 = arith.maximumf %5, %7 : vector<128x128xf32>
    %9 = arith.truncf %8 : vector<128x128xf32> to vector<128x128xbf16>
    %c0_7 = arith.constant 0 : index
    %c0_8 = arith.constant 0 : index
    %10 = vector.load %arg5[%c0_7, %c0_8] : memref<128x128xbf16, #tpu.memory_space<vmem>>, vector<128x128xbf16>
    %cst_9 = arith.constant dense<0.000000e+00> : vector<128x128xf32>
    %11 = tpu.matmul %9, %10, %cst_9 {dimension_numbers = #tpu.dot_dimension_numbers<[1], [0], [0], [1], [0, 0, 1, 1], [], []>} : vector<128x128xbf16>, vector<128x128xbf16>, vector<128x128xf32> -> vector<128x128xf32>
    %c0_10 = arith.constant 0 : index
    %c0_11 = arith.constant 0 : index
    %12 = vector.load %arg6[%c0_10, %c0_11] : memref<1x128xf32, #tpu.memory_space<vmem>>, vector<1x128xf32>
    %13 = vector.broadcast %12 : vector<1x128xf32> to vector<128x128xf32>
    %14 = arith.addf %11, %13 : vector<128x128xf32>
    %c0_12 = arith.constant 0 : index
    %c0_13 = arith.constant 0 : index
    %15 = vector.load %arg7[%c0_12, %c0_13] : memref<128x128xf32, #tpu.memory_space<vmem>>, vector<128x128xf32>
    tpu.vector_store %arg7[%c0_12, %c0_13], %14 {strides = array<i32>} : memref<128x128xf32, #tpu.memory_space<vmem>>, vector<128x128xf32>,
    return
  }
  func.func @transform_0(%arg0: i32) -> (i32, i32) {
    %c0_i32 = arith.constant 0 : i32
    %c0_i32_0 = arith.constant 0 : i32
    return %arg0, %c0_i32 : i32, i32
  }
  func.func @transform_1(%arg0: i32) -> (i32, i32) {
    %c0_i32 = arith.constant 0 : i32
    %c0_i32_0 = arith.constant 0 : i32
    %c0_i32_1 = arith.constant 0 : i32
    return %c0_i32, %c0_i32_0 : i32, i32
  }
  func.func @transform_2(%arg0: i32) -> (i32, i32) {
    %c0_i32 = arith.constant 0 : i32
    %c0_i32_0 = arith.constant 0 : i32
    %c0_i32_1 = arith.constant 0 : i32
    return %c0_i32, %c0_i32_0 : i32, i32
  }
  func.func @transform_3(%arg0: i32) -> (i32, i32) {
    %c0_i32 = arith.constant 0 : i32
    %c0_i32_0 = arith.constant 0 : i32
    %c0_i32_1 = arith.constant 0 : i32
    return %c0_i32, %c0_i32_0 : i32, i32
  }
  func.func @transform_4(%arg0: i32) -> (i32, i32) {
    %c0_i32 = arith.constant 0 : i32
    %c0_i32_0 = arith.constant 0 : i32
    %c0_i32_1 = arith.constant 0 : i32
    return %c0_i32, %c0_i32_0 : i32, i32
  }
  func.func @transform_5(%arg0: i32) -> (i32, i32) {
    %c0_i32 = arith.constant 0 : i32
    %c0_i32_0 = arith.constant 0 : i32
    %c0_i32_1 = arith.constant 0 : i32
    return %c0_i32, %c0_i32_0 : i32, i32
  }
  func.func @transform_6(%arg0: i32) -> (i32, i32) {
    %c0_i32 = arith.constant 0 : i32
    %c0_i32_0 = arith.constant 0 : i32
    return %arg0, %c0_i32 : i32, i32
  }
}

module attributes {stable_mosaic.version = 11 : i64} {
  func.func @_nms_sigmoid_kernel(%arg0: i32, %arg1: memref<8x16x128xf32, #tpu.memory_space<vmem>>, %arg2: memref<8x16x128xf32, #tpu.memory_space<vmem>>) attributes {dimension_semantics = [#tpu.dimension_semantics<arbitrary>], iteration_bounds = array<i64: 1>, scalar_prefetch = 0 : i64, scratch_operands = 0 : i64, tpu.core_type = #tpu.core_type<tc>, window_params = [{pipeline_mode = #tpu.pipeline_mode<synchronous>, transform_indices = @transform_0, window_bounds = array<i64: 8, 16, 128>}, {pipeline_mode = #tpu.pipeline_mode<synchronous>, transform_indices = @transform_1, window_bounds = array<i64: 8, 16, 128>}]} {
    %c0 = arith.constant 0 : index
    %c0_0 = arith.constant 0 : index
    %c0_1 = arith.constant 0 : index
    %0 = vector.load %arg1[%c0, %c0_0, %c0_1] : memref<8x16x128xf32, #tpu.memory_space<vmem>>, vector<8x16x128xf32>
    %cst = arith.constant 5.000000e-01 : f32
    %1 = vector.broadcast %cst : f32 to vector<8x16x128xf32>
    %2 = arith.mulf %1, %0 : vector<8x16x128xf32>
    %3 = math.tanh %2 : vector<8x16x128xf32>
    %cst_2 = arith.constant 1.000000e+00 : f32
    %4 = vector.broadcast %cst_2 : f32 to vector<8x16x128xf32>
    %5 = arith.addf %3, %4 : vector<8x16x128xf32>
    %cst_3 = arith.constant 5.000000e-01 : f32
    %6 = vector.broadcast %cst_3 : f32 to vector<8x16x128xf32>
    %7 = arith.mulf %6, %5 : vector<8x16x128xf32>
    %8 = vector.extract_strided_slice %7 {offsets = [0, 0, 127], sizes = [8, 16, 1], strides = [1, 1, 1]} : vector<8x16x128xf32> to vector<8x16x1xf32>
    %9 = vector.extract_strided_slice %7 {offsets = [0, 0, 0], sizes = [8, 16, 127], strides = [1, 1, 1]} : vector<8x16x128xf32> to vector<8x16x127xf32>
    %10 = tpu.concatenate %8, %9 in 2 : vector<8x16x1xf32>, vector<8x16x127xf32> -> vector<8x16x128xf32>
    %11 = vector.extract_strided_slice %7 {offsets = [0, 0, 1], sizes = [8, 16, 127], strides = [1, 1, 1]} : vector<8x16x128xf32> to vector<8x16x127xf32>
    %12 = vector.extract_strided_slice %7 {offsets = [0, 0, 0], sizes = [8, 16, 1], strides = [1, 1, 1]} : vector<8x16x128xf32> to vector<8x16x1xf32>
    %13 = tpu.concatenate %11, %12 in 2 : vector<8x16x127xf32>, vector<8x16x1xf32> -> vector<8x16x128xf32>
    %14 = arith.maximumf %10, %13 : vector<8x16x128xf32>
    %15 = arith.maximumf %7, %14 : vector<8x16x128xf32>
    %16 = vector.extract_strided_slice %15 {offsets = [0, 15, 0], sizes = [8, 1, 128], strides = [1, 1, 1]} : vector<8x16x128xf32> to vector<8x1x128xf32>
    %17 = vector.extract_strided_slice %15 {offsets = [0, 0, 0], sizes = [8, 15, 128], strides = [1, 1, 1]} : vector<8x16x128xf32> to vector<8x15x128xf32>
    %18 = tpu.concatenate %16, %17 in 1 : vector<8x1x128xf32>, vector<8x15x128xf32> -> vector<8x16x128xf32>
    %19 = vector.extract_strided_slice %15 {offsets = [0, 1, 0], sizes = [8, 15, 128], strides = [1, 1, 1]} : vector<8x16x128xf32> to vector<8x15x128xf32>
    %20 = vector.extract_strided_slice %15 {offsets = [0, 0, 0], sizes = [8, 1, 128], strides = [1, 1, 1]} : vector<8x16x128xf32> to vector<8x1x128xf32>
    %21 = tpu.concatenate %19, %20 in 1 : vector<8x15x128xf32>, vector<8x1x128xf32> -> vector<8x16x128xf32>
    %22 = arith.maximumf %18, %21 : vector<8x16x128xf32>
    %23 = arith.maximumf %15, %22 : vector<8x16x128xf32>
    %24 = arith.cmpf oge, %7, %23 : vector<8x16x128xf32>
    %cst_4 = arith.constant 0.000000e+00 : f32
    %25 = vector.broadcast %cst_4 : f32 to vector<8x16x128xf32>
    %26 = arith.select %24, %7, %25 : vector<8x16x128xi1>, vector<8x16x128xf32>
    %c0_5 = arith.constant 0 : index
    %c0_6 = arith.constant 0 : index
    %c0_7 = arith.constant 0 : index
    %27 = vector.load %arg2[%c0_5, %c0_6, %c0_7] : memref<8x16x128xf32, #tpu.memory_space<vmem>>, vector<8x16x128xf32>
    tpu.vector_store %arg2[%c0_5, %c0_6, %c0_7], %26 {strides = array<i32>} : memref<8x16x128xf32, #tpu.memory_space<vmem>>, vector<8x16x128xf32>,
    return
  }
  func.func @transform_0(%arg0: i32) -> (i32, i32, i32) {
    %c0_i32 = arith.constant 0 : i32
    %c0_i32_0 = arith.constant 0 : i32
    %c0_i32_1 = arith.constant 0 : i32
    %c0_i32_2 = arith.constant 0 : i32
    return %c0_i32, %c0_i32_0, %c0_i32_1 : i32, i32, i32
  }
  func.func @transform_1(%arg0: i32) -> (i32, i32, i32) {
    %c0_i32 = arith.constant 0 : i32
    %c0_i32_0 = arith.constant 0 : i32
    %c0_i32_1 = arith.constant 0 : i32
    %c0_i32_2 = arith.constant 0 : i32
    return %c0_i32, %c0_i32_0, %c0_i32_1 : i32, i32, i32
  }
}

module attributes {stable_mosaic.version = 11 : i64} {
  func.func @_evolve_mlp_kernel(%arg0: i32, %arg1: memref<256x18xbf16, #tpu.memory_space<vmem>>, %arg2: memref<18x32xbf16, #tpu.memory_space<vmem>>, %arg3: memref<1x32xf32, #tpu.memory_space<vmem>>, %arg4: memref<32x128xbf16, #tpu.memory_space<vmem>>, %arg5: memref<1x128xf32, #tpu.memory_space<vmem>>, %arg6: memref<256x128xf32, #tpu.memory_space<vmem>>) attributes {dimension_semantics = [#tpu.dimension_semantics<parallel>], iteration_bounds = array<i64: 1>, scalar_prefetch = 0 : i64, scratch_operands = 0 : i64, tpu.core_type = #tpu.core_type<tc>, window_params = [{transform_indices = @transform_0, window_bounds = array<i64: 256, 18>}, {pipeline_mode = #tpu.pipeline_mode<synchronous>, transform_indices = @transform_1, window_bounds = array<i64: 18, 32>}, {pipeline_mode = #tpu.pipeline_mode<synchronous>, transform_indices = @transform_2, window_bounds = array<i64: 1, 32>}, {pipeline_mode = #tpu.pipeline_mode<synchronous>, transform_indices = @transform_3, window_bounds = array<i64: 32, 128>}, {pipeline_mode = #tpu.pipeline_mode<synchronous>, transform_indices = @transform_4, window_bounds = array<i64: 1, 128>}, {transform_indices = @transform_5, window_bounds = array<i64: 256, 128>}]} {
    %c0 = arith.constant 0 : index
    %c0_0 = arith.constant 0 : index
    %0 = vector.load %arg1[%c0, %c0_0] : memref<256x18xbf16, #tpu.memory_space<vmem>>, vector<256x18xbf16>
    %c0_1 = arith.constant 0 : index
    %c0_2 = arith.constant 0 : index
    %1 = vector.load %arg2[%c0_1, %c0_2] : memref<18x32xbf16, #tpu.memory_space<vmem>>, vector<18x32xbf16>
    %cst = arith.constant dense<0.000000e+00> : vector<256x32xf32>
    %2 = tpu.matmul %0, %1, %cst {dimension_numbers = #tpu.dot_dimension_numbers<[1], [0], [0], [1], [0, 0, 1, 1], [], []>} : vector<256x18xbf16>, vector<18x32xbf16>, vector<256x32xf32> -> vector<256x32xf32>
    %c0_3 = arith.constant 0 : index
    %c0_4 = arith.constant 0 : index
    %3 = vector.load %arg3[%c0_3, %c0_4] : memref<1x32xf32, #tpu.memory_space<vmem>>, vector<1x32xf32>
    %4 = vector.broadcast %3 : vector<1x32xf32> to vector<256x32xf32>
    %5 = arith.addf %2, %4 : vector<256x32xf32>
    %cst_5 = arith.constant 0.000000e+00 : f32
    %6 = vector.broadcast %cst_5 : f32 to vector<256x32xf32>
    %7 = arith.maximumf %5, %6 : vector<256x32xf32>
    %8 = arith.truncf %7 : vector<256x32xf32> to vector<256x32xbf16>
    %c0_6 = arith.constant 0 : index
    %c0_7 = arith.constant 0 : index
    %9 = vector.load %arg4[%c0_6, %c0_7] : memref<32x128xbf16, #tpu.memory_space<vmem>>, vector<32x128xbf16>
    %cst_8 = arith.constant dense<0.000000e+00> : vector<256x128xf32>
    %10 = tpu.matmul %8, %9, %cst_8 {dimension_numbers = #tpu.dot_dimension_numbers<[1], [0], [0], [1], [0, 0, 1, 1], [], []>} : vector<256x32xbf16>, vector<32x128xbf16>, vector<256x128xf32> -> vector<256x128xf32>
    %c0_9 = arith.constant 0 : index
    %c0_10 = arith.constant 0 : index
    %11 = vector.load %arg5[%c0_9, %c0_10] : memref<1x128xf32, #tpu.memory_space<vmem>>, vector<1x128xf32>
    %12 = vector.broadcast %11 : vector<1x128xf32> to vector<256x128xf32>
    %13 = arith.addf %10, %12 : vector<256x128xf32>
    %14 = math.tanh %13 : vector<256x128xf32>
    %cst_11 = arith.constant 4.000000e+00 : f32
    %15 = vector.broadcast %cst_11 : f32 to vector<256x128xf32>
    %16 = arith.mulf %15, %14 : vector<256x128xf32>
    %c0_12 = arith.constant 0 : index
    %c0_13 = arith.constant 0 : index
    %17 = vector.load %arg6[%c0_12, %c0_13] : memref<256x128xf32, #tpu.memory_space<vmem>>, vector<256x128xf32>
    tpu.vector_store %arg6[%c0_12, %c0_13], %16 {strides = array<i32>} : memref<256x128xf32, #tpu.memory_space<vmem>>, vector<256x128xf32>,
    return
  }
  func.func @transform_0(%arg0: i32) -> (i32, i32) {
    %c0_i32 = arith.constant 0 : i32
    %c0_i32_0 = arith.constant 0 : i32
    return %arg0, %c0_i32 : i32, i32
  }
  func.func @transform_1(%arg0: i32) -> (i32, i32) {
    %c0_i32 = arith.constant 0 : i32
    %c0_i32_0 = arith.constant 0 : i32
    %c0_i32_1 = arith.constant 0 : i32
    return %c0_i32, %c0_i32_0 : i32, i32
  }
  func.func @transform_2(%arg0: i32) -> (i32, i32) {
    %c0_i32 = arith.constant 0 : i32
    %c0_i32_0 = arith.constant 0 : i32
    %c0_i32_1 = arith.constant 0 : i32
    return %c0_i32, %c0_i32_0 : i32, i32
  }
  func.func @transform_3(%arg0: i32) -> (i32, i32) {
    %c0_i32 = arith.constant 0 : i32
    %c0_i32_0 = arith.constant 0 : i32
    %c0_i32_1 = arith.constant 0 : i32
    return %c0_i32, %c0_i32_0 : i32, i32
  }
  func.func @transform_4(%arg0: i32) -> (i32, i32) {
    %c0_i32 = arith.constant 0 : i32
    %c0_i32_0 = arith.constant 0 : i32
    %c0_i32_1 = arith.constant 0 : i32
    return %c0_i32, %c0_i32_0 : i32, i32
  }
  func.func @transform_5(%arg0: i32) -> (i32, i32) {
    %c0_i32 = arith.constant 0 : i32
    %c0_i32_0 = arith.constant 0 : i32
    return %arg0, %c0_i32 : i32, i32
  }
}

</mosaic_0001>

<bundles_post_ra>
// kernel: network_forward.6
= control target key start
LH: loop header
LB: loop body
LE: loop exit
PB: predicated region body
PF: predicated region fallthrough
CT: control target
= control target key end

     0   :  { %vm358_vm0 = vcmask 1044480   ;;  %vm359_vm1 = vcmask 1045504   ;;  %vm261_vm2 = vcmask 220160   ;;  %v994_v1 = vmov 65535   ;;  %s1410_s1 = inlined_call_operand.vmem [shape: bf16[27,128], index: 1, kind: input, shape index: {}]   ;;  %s1411_s0 = inlined_call_operand.vmem [shape: bf16[512,27], index: 0, kind: input, shape index: {}]   ;;  %s1412_s2 = inlined_call_operand.vmem [shape: f32[1,128], index: 2, kind: input, shape index: {}]   ;;  %s1413_s3 = inlined_call_operand.vmem [shape: f32[512,128], index: 3, kind: output, shape index: {}]  }
   0x1   :  { %v960_v0 = vld [vmem:[%s1410_s1] sm:$0xff]   ;;  %v360_v2 = vsel %vm358_vm0, 4294967295, %v994_v1  ;;  %v961_v3 = vld [vmem:[%s1410_s1 + $0x8] sm:$0x3f]   ;;  %v966_v10 = vld [vmem:[%s1411_s0 + $0x10] sm:$0xff]  }
   0x2   :  { %887 = vmatprep.subr.bf16.mxu0 %v960_v0  ;;  %955 = vmatprep.subr.bf16.mxu1 %v960_v0  ;;  %v361_v4 = vsel %vm359_vm1, %v360_v2, 0  ;;  %v962_v5 = vld [vmem:[%s1411_s0] sm:$0xff]   ;;  %v964_v8 = vld [vmem:[%s1411_s0 + $0x8] sm:$0xff]   ;;  %v967_v11 = vld [vmem:[%s1411_s0 + $0x90] sm:$0xff]  }
   0x3   :  { %888 = vmatpush3.bf16.msra.mxu0 %v960_v0  ;;  %957 = vmatpush3.bf16.msra.mxu1 %v960_v0  ;;  %v363_v6 = vand.u32 %v961_v3, %v361_v4  ;;  %v963_v7 = vld [vmem:[%s1411_s0 + $0x80] sm:$0xff]   ;;  %v965_v9 = vld [vmem:[%s1411_s0 + $0x88] sm:$0xff]   ;;  %v968_v12 = vld [vmem:[%s1411_s0 + $0x18] sm:$0xff]  }
   0x4   :  { %891 = vmatprep.mubr.msk.bf16.mxu0 %vm261_vm2, %v962_v5  ;;  %923 = vmatprep.mubr.msk.bf16.mxu1 %vm261_vm2, %v963_v7  ;;  %v969_v13 = vld [vmem:[%s1411_s0 + $0x98] sm:$0xff]   ;;  %v970_v14 = vld [vmem:[%s1411_s0 + $0x20] sm:$0xff]   ;;  %v972_v16 = vld [vmem:[%s1411_s0 + $0x28] sm:$0xff]  }
   0x5   :  { %889 = vmatprep.subr.bf16.mxu0 %v363_v6  ;;  %956 = vmatprep.subr.bf16.mxu1 %v363_v6  ;;  %v971_v15 = vld [vmem:[%s1411_s0 + $0xa0] sm:$0xff]   ;;  %v973_v17 = vld [vmem:[%s1411_s0 + $0xa8] sm:$0xff]   ;;  %v974_v18 = vld [vmem:[%s1411_s0 + $0x30] sm:$0xff]  }
   0x6   :  { %v975_v19 = vld [vmem:[%s1411_s0 + $0xb0] sm:$0xff]   ;;  %v976_v20 = vld [vmem:[%s1411_s0 + $0x38] sm:$0xff]   ;;  %v978_v22 = vld [vmem:[%s1411_s0 + $0x40] sm:$0xff]  }
   0x7   :  { %890 = vmatpush3.bf16.msra.mxu0 %v363_v6  ;;  %958 = vmatpush3.bf16.msra.mxu1 %v363_v6  ;;  %v977_v21 = vld [vmem:[%s1411_s0 + $0xb8] sm:$0xff]   ;;  %v979_v23 = vld [vmem:[%s1411_s0 + $0xc0] sm:$0xff]   ;;  %v980_v24 = vld [vmem:[%s1411_s0 + $0x48] sm:$0xff]  }
   0x8   :  { %v981_v25 = vld [vmem:[%s1411_s0 + $0xc8] sm:$0xff]   ;;  %v982_v26 = vld [vmem:[%s1411_s0 + $0x50] sm:$0xff]   ;;  %v984_v28 = vld [vmem:[%s1411_s0 + $0x58] sm:$0xff]  }
   0x9   :  { %v983_v27 = vld [vmem:[%s1411_s0 + $0xd0] sm:$0xff]   ;;  %v985_v29 = vld [vmem:[%s1411_s0 + $0xd8] sm:$0xff]   ;;  %v986_v30 = vld [vmem:[%s1411_s0 + $0x60] sm:$0xff]  }
   0xa   :  { %892 = vmatmul.mubr.msk.bf16.vlgmr.msra.gmra.mrb[0].mxu0 %vm261_vm2, %v964_v8  ;;  %924 = vmatmul.mubr.msk.bf16.vlgmr.msra.gmra.mrb[0].mxu1 %vm261_vm2, %v965_v9  ;;  %v987_v31 = vld [vmem:[%s1411_s0 + $0xe0] sm:$0xff]   ;;  %v988_v32 = vld [vmem:[%s1411_s0 + $0x68] sm:$0xff]   ;;  %v990_v34 = vld [vmem:[%s1411_s0 + $0x70] sm:$0xff]  }
   0xb   :  { %895 = vmatprep.mubr.msk.bf16.mxu0 %vm261_vm2, %v966_v10  ;;  %927 = vmatprep.mubr.msk.bf16.mxu1 %vm261_vm2, %v967_v11  ;;  %v989_v33 = vld [vmem:[%s1411_s0 + $0xe8] sm:$0xff]   ;;  %v991_v35 = vld [vmem:[%s1411_s0 + $0xf0] sm:$0xff]   ;;  %v992_v36 = vld [vmem:[%s1411_s0 + $0x78] sm:$0xff]  }
   0xc   :  { %v993_v37 = vld [vmem:[%s1411_s0 + $0xf8] sm:$0xff]   ;;  %v1152_v38 = vld [vmem:[%s1412_s2] ss:$0 sm:$0xff] }
  0x12   :  { %896 = vmatmul.mubr.msk.bf16.gmra.mrb[4].mxu0 %vm261_vm2, %v968_v12  ;;  %928 = vmatmul.mubr.msk.bf16.gmra.mrb[4].mxu1 %vm261_vm2, %v969_v13 }
  0x13   :  { %899 = vmatprep.mubr.msk.bf16.mxu0 %vm261_vm2, %v970_v14  ;;  %931 = vmatprep.mubr.msk.bf16.mxu1 %vm261_vm2, %v971_v15 }
  0x1a   :  { %900 = vmatmul.mubr.msk.bf16.gmra.mrb[8].mxu0 %vm261_vm2, %v972_v16  ;;  %932 = vmatmul.mubr.msk.bf16.gmra.mrb[8].mxu1 %vm261_vm2, %v973_v17 }
  0x1b   :  { %903 = vmatprep.mubr.msk.bf16.mxu0 %vm261_vm2, %v974_v18  ;;  %935 = vmatprep.mubr.msk.bf16.mxu1 %vm261_vm2, %v975_v19 }
  0x22   :  { %904 = vmatmul.mubr.msk.bf16.gmra.mrb[12].mxu0 %vm261_vm2, %v976_v20  ;;  %936 = vmatmul.mubr.msk.bf16.gmra.mrb[12].mxu1 %vm261_vm2, %v977_v21 }
  0x23   :  { %907 = vmatprep.mubr.msk.bf16.mxu0 %vm261_vm2, %v978_v22  ;;  %939 = vmatprep.mubr.msk.bf16.mxu1 %vm261_vm2, %v979_v23 }
  0x2a   :  { %908 = vmatmul.mubr.msk.bf16.gmra.mrb[16].mxu0 %vm261_vm2, %v980_v24  ;;  %940 = vmatmul.mubr.msk.bf16.gmra.mrb[16].mxu1 %vm261_vm2, %v981_v25 }
  0x2b   :  { %911 = vmatprep.mubr.msk.bf16.mxu0 %vm261_vm2, %v982_v26  ;;  %943 = vmatprep.mubr.msk.bf16.mxu1 %vm261_vm2, %v983_v27 }
  0x32   :  { %912 = vmatmul.mubr.msk.bf16.gmra.mrb[20].mxu0 %vm261_vm2, %v984_v28  ;;  %944 = vmatmul.mubr.msk.bf16.gmra.mrb[20].mxu1 %vm261_vm2, %v985_v29 }
  0x33   :  { %915 = vmatprep.mubr.msk.bf16.mxu0 %vm261_vm2, %v986_v30  ;;  %947 = vmatprep.mubr.msk.bf16.mxu1 %vm261_vm2, %v987_v31 }
  0x3a   :  { %916 = vmatmul.mubr.msk.bf16.gmra.mrb[24].mxu0 %vm261_vm2, %v988_v32  ;;  %948 = vmatmul.mubr.msk.bf16.gmra.mrb[24].mxu1 %vm261_vm2, %v989_v33 }
  0x3b   :  { %919 = vmatprep.mubr.msk.bf16.mxu0 %vm261_vm2, %v990_v34  ;;  %951 = vmatprep.mubr.msk.bf16.mxu1 %vm261_vm2, %v991_v35 }
  0x42   :  { %920 = vmatmul.mubr.msk.bf16.gmra.mrb[28].mxu0 %vm261_vm2, %v992_v36  ;;  %952 = vmatmul.mubr.msk.bf16.gmra.mrb[28].mxu1 %vm261_vm2, %v993_v37 }
  0xdd   :  { %v893_v39 = vpop.f32.mrb[0].mxu0  ;;  %v925_v40 = vpop.f32.mrb[0].mxu1 }
  0xde   :  { %v408_v41 = vadd.f32 %v893_v39, %v1152_v38  ;;  %v536_v42 = vadd.f32 %v925_v40, %v1152_v38  ;;  %v399_v43 = vpop.f32.mrb[1].mxu0  ;;  %v527_v44 = vpop.f32.mrb[1].mxu1 }
  0xdf   :  { %v400_v45 = vadd.f32 %v1152_v38, %v399_v43  ;;  %v528_v46 = vadd.f32 %v1152_v38, %v527_v44  ;;  %v894_v47 = vpop.f32.mrb[2].mxu0  ;;  %v926_v48 = vpop.f32.mrb[2].mxu1 }
  0xe0   :  { %v656_v49 = vmax.f32 %v408_v41, 0.0  ;;  %v688_v50 = vmax.f32 %v536_v42, 0.0  ;;  %v411_v51 = vadd.f32 %v894_v47, %v1152_v38  ;;  %v539_v52 = vadd.f32 %v926_v48, %v1152_v38  ;;  %v402_v53 = vpop.f32.mrb[3].mxu0  ;;  %v530_v54 = vpop.f32.mrb[3].mxu1 }
  0xe1   :  { %v654_v55 = vmax.f32 %v400_v45, 0.0  ;;  %v686_v56 = vmax.f32 %v528_v46, 0.0  ;;  %v403_v57 = vadd.f32 %v1152_v38, %v402_v53  ;;  %v531_v58 = vadd.f32 %v1152_v38, %v530_v54 }
  0xe2   :  { %720 = vst [vmem:[%s1413_s3 + $0x10] sm:$0xff] %v656_v49  ;;  %752 = vst [vmem:[%s1413_s3 + $0x110] sm:$0xff] %v688_v50  ;;  %v657_v59 = vmax.f32 %v411_v51, 0.0  ;;  %v689_v60 = vmax.f32 %v539_v52, 0.0 }
  0xe3   :  { %718 = vst [vmem:[%s1413_s3] sm:$0xff] %v654_v55  ;;  %750 = vst [vmem:[%s1413_s3 + $0x100] sm:$0xff] %v686_v56  ;;  %v655_v61 = vmax.f32 %v403_v57, 0.0  ;;  %v687_v62 = vmax.f32 %v531_v58, 0.0 }
  0xe4   :  { %721 = vst [vmem:[%s1413_s3 + $0x18] sm:$0xff] %v657_v59  ;;  %753 = vst [vmem:[%s1413_s3 + $0x118] sm:$0xff] %v689_v60 }
  0xe5   :  { %719 = vst [vmem:[%s1413_s3 + $0x8] sm:$0xff] %v655_v61  ;;  %751 = vst [vmem:[%s1413_s3 + $0x108] sm:$0xff] %v687_v62  ;;  %v897_v63 = vpop.f32.mrb[4].mxu0  ;;  %v929_v0 = vpop.f32.mrb[4].mxu1 }
  0xe6   :  { %v424_v1 = vadd.f32 %v897_v63, %v1152_v38  ;;  %v552_v2 = vadd.f32 %v929_v0, %v1152_v38  ;;  %v415_v3 = vpop.f32.mrb[5].mxu0  ;;  %v543_v4 = vpop.f32.mrb[5].mxu1 }
  0xe7   :  { %v416_v5 = vadd.f32 %v1152_v38, %v415_v3  ;;  %v544_v6 = vadd.f32 %v1152_v38, %v543_v4  ;;  %v898_v7 = vpop.f32.mrb[6].mxu0  ;;  %v930_v8 = vpop.f32.mrb[6].mxu1 }
  0xe8   :  { %v660_v9 = vmax.f32 %v424_v1, 0.0  ;;  %v692_v10 = vmax.f32 %v552_v2, 0.0  ;;  %v427_v11 = vadd.f32 %v898_v7, %v1152_v38  ;;  %v555_v12 = vadd.f32 %v930_v8, %v1152_v38  ;;  %v418_v13 = vpop.f32.mrb[7].mxu0  ;;  %v546_v14 = vpop.f32.mrb[7].mxu1 }
  0xe9   :  { %v658_v15 = vmax.f32 %v416_v5, 0.0  ;;  %v690_v16 = vmax.f32 %v544_v6, 0.0  ;;  %v419_v17 = vadd.f32 %v1152_v38, %v418_v13  ;;  %v547_v18 = vadd.f32 %v1152_v38, %v546_v14 }
  0xea   :  { %724 = vst [vmem:[%s1413_s3 + $0x30] sm:$0xff] %v660_v9  ;;  %756 = vst [vmem:[%s1413_s3 + $0x130] sm:$0xff] %v692_v10  ;;  %v661_v19 = vmax.f32 %v427_v11, 0.0  ;;  %v693_v20 = vmax.f32 %v555_v12, 0.0 }
  0xeb   :  { %722 = vst [vmem:[%s1413_s3 + $0x20] sm:$0xff] %v658_v15  ;;  %754 = vst [vmem:[%s1413_s3 + $0x120] sm:$0xff] %v690_v16  ;;  %v659_v21 = vmax.f32 %v419_v17, 0.0  ;;  %v691_v22 = vmax.f32 %v547_v18, 0.0 }
  0xec   :  { %725 = vst [vmem:[%s1413_s3 + $0x38] sm:$0xff] %v661_v19  ;;  %757 = vst [vmem:[%s1413_s3 + $0x138] sm:$0xff] %v693_v20 }
  0xed   :  { %723 = vst [vmem:[%s1413_s3 + $0x28] sm:$0xff] %v659_v21  ;;  %755 = vst [vmem:[%s1413_s3 + $0x128] sm:$0xff] %v691_v22  ;;  %v901_v23 = vpop.f32.mrb[8].mxu0  ;;  %v933_v24 = vpop.f32.mrb[8].mxu1 }
  0xee   :  { %v440_v25 = vadd.f32 %v901_v23, %v1152_v38  ;;  %v568_v26 = vadd.f32 %v933_v24, %v1152_v38  ;;  %v431_v27 = vpop.f32.mrb[9].mxu0  ;;  %v559_v28 = vpop.f32.mrb[9].mxu1 }
  0xef   :  { %v432_v29 = vadd.f32 %v1152_v38, %v431_v27  ;;  %v560_v30 = vadd.f32 %v1152_v38, %v559_v28  ;;  %v902_v31 = vpop.f32.mrb[10].mxu0  ;;  %v934_v32 = vpop.f32.mrb[10].mxu1 }
  0xf0   :  { %v664_v33 = vmax.f32 %v440_v25, 0.0  ;;  %v696_v34 = vmax.f32 %v568_v26, 0.0  ;;  %v443_v35 = vadd.f32 %v902_v31, %v1152_v38  ;;  %v571_v36 = vadd.f32 %v934_v32, %v1152_v38  ;;  %v434_v37 = vpop.f32.mrb[11].mxu0  ;;  %v562_v39 = vpop.f32.mrb[11].mxu1 }
  0xf1   :  { %v662_v40 = vmax.f32 %v432_v29, 0.0  ;;  %v694_v41 = vmax.f32 %v560_v30, 0.0  ;;  %v435_v42 = vadd.f32 %v1152_v38, %v434_v37  ;;  %v563_v43 = vadd.f32 %v1152_v38, %v562_v39 }
  0xf2   :  { %728 = vst [vmem:[%s1413_s3 + $0x50] sm:$0xff] %v664_v33  ;;  %760 = vst [vmem:[%s1413_s3 + $0x150] sm:$0xff] %v696_v34  ;;  %v665_v44 = vmax.f32 %v443_v35, 0.0  ;;  %v697_v45 = vmax.f32 %v571_v36, 0.0 }
  0xf3   :  { %726 = vst [vmem:[%s1413_s3 + $0x40] sm:$0xff] %v662_v40  ;;  %758 = vst [vmem:[%s1413_s3 + $0x140] sm:$0xff] %v694_v41  ;;  %v663_v46 = vmax.f32 %v435_v42, 0.0  ;;  %v695_v47 = vmax.f32 %v563_v43, 0.0 }
  0xf4   :  { %729 = vst [vmem:[%s1413_s3 + $0x58] sm:$0xff] %v665_v44  ;;  %761 = vst [vmem:[%s1413_s3 + $0x158] sm:$0xff] %v697_v45 }
  0xf5   :  { %727 = vst [vmem:[%s1413_s3 + $0x48] sm:$0xff] %v663_v46  ;;  %759 = vst [vmem:[%s1413_s3 + $0x148] sm:$0xff] %v695_v47  ;;  %v905_v48 = vpop.f32.mrb[12].mxu0  ;;  %v937_v49 = vpop.f32.mrb[12].mxu1 }
  0xf6   :  { %v456_v50 = vadd.f32 %v905_v48, %v1152_v38  ;;  %v584_v51 = vadd.f32 %v937_v49, %v1152_v38  ;;  %v447_v52 = vpop.f32.mrb[13].mxu0  ;;  %v575_v53 = vpop.f32.mrb[13].mxu1 }
  0xf7   :  { %v448_v54 = vadd.f32 %v1152_v38, %v447_v52  ;;  %v576_v55 = vadd.f32 %v1152_v38, %v575_v53  ;;  %v906_v56 = vpop.f32.mrb[14].mxu0  ;;  %v938_v57 = vpop.f32.mrb[14].mxu1 }
  0xf8   :  { %v668_v58 = vmax.f32 %v456_v50, 0.0  ;;  %v700_v59 = vmax.f32 %v584_v51, 0.0  ;;  %v459_v60 = vadd.f32 %v906_v56, %v1152_v38  ;;  %v587_v61 = vadd.f32 %v938_v57, %v1152_v38  ;;  %v450_v62 = vpop.f32.mrb[15].mxu0  ;;  %v578_v63 = vpop.f32.mrb[15].mxu1 }
  0xf9   :  { %v666_v0 = vmax.f32 %v448_v54, 0.0  ;;  %v698_v1 = vmax.f32 %v576_v55, 0.0  ;;  %v451_v2 = vadd.f32 %v1152_v38, %v450_v62  ;;  %v579_v3 = vadd.f32 %v1152_v38, %v578_v63 }
  0xfa   :  { %732 = vst [vmem:[%s1413_s3 + $0x70] sm:$0xff] %v668_v58  ;;  %764 = vst [vmem:[%s1413_s3 + $0x170] sm:$0xff] %v700_v59  ;;  %v669_v4 = vmax.f32 %v459_v60, 0.0  ;;  %v701_v5 = vmax.f32 %v587_v61, 0.0 }
  0xfb   :  { %730 = vst [vmem:[%s1413_s3 + $0x60] sm:$0xff] %v666_v0  ;;  %762 = vst [vmem:[%s1413_s3 + $0x160] sm:$0xff] %v698_v1  ;;  %v667_v6 = vmax.f32 %v451_v2, 0.0  ;;  %v699_v7 = vmax.f32 %v579_v3, 0.0 }
  0xfc   :  { %733 = vst [vmem:[%s1413_s3 + $0x78] sm:$0xff] %v669_v4  ;;  %765 = vst [vmem:[%s1413_s3 + $0x178] sm:$0xff] %v701_v5 }
  0xfd   :  { %731 = vst [vmem:[%s1413_s3 + $0x68] sm:$0xff] %v667_v6  ;;  %763 = vst [vmem:[%s1413_s3 + $0x168] sm:$0xff] %v699_v7  ;;  %v909_v8 = vpop.f32.mrb[16].mxu0  ;;  %v941_v9 = vpop.f32.mrb[16].mxu1 }
  0xfe   :  { %v472_v10 = vadd.f32 %v909_v8, %v1152_v38  ;;  %v600_v11 = vadd.f32 %v941_v9, %v1152_v38  ;;  %v463_v12 = vpop.f32.mrb[17].mxu0  ;;  %v591_v13 = vpop.f32.mrb[17].mxu1 }
  0xff   :  { %v464_v14 = vadd.f32 %v1152_v38, %v463_v12  ;;  %v592_v15 = vadd.f32 %v1152_v38, %v591_v13  ;;  %v910_v16 = vpop.f32.mrb[18].mxu0  ;;  %v942_v17 = vpop.f32.mrb[18].mxu1 }
 0x100   :  { %v672_v18 = vmax.f32 %v472_v10, 0.0  ;;  %v704_v19 = vmax.f32 %v600_v11, 0.0  ;;  %v475_v20 = vadd.f32 %v910_v16, %v1152_v38  ;;  %v603_v21 = vadd.f32 %v942_v17, %v1152_v38  ;;  %v466_v22 = vpop.f32.mrb[19].mxu0  ;;  %v594_v23 = vpop.f32.mrb[19].mxu1 }
 0x101   :  { %v670_v24 = vmax.f32 %v464_v14, 0.0  ;;  %v702_v25 = vmax.f32 %v592_v15, 0.0  ;;  %v467_v26 = vadd.f32 %v1152_v38, %v466_v22  ;;  %v595_v27 = vadd.f32 %v1152_v38, %v594_v23 }
 0x102   :  { %736 = vst [vmem:[%s1413_s3 + $0x90] sm:$0xff] %v672_v18  ;;  %768 = vst [vmem:[%s1413_s3 + $0x190] sm:$0xff] %v704_v19  ;;  %v673_v28 = vmax.f32 %v475_v20, 0.0  ;;  %v705_v29 = vmax.f32 %v603_v21, 0.0 }
 0x103   :  { %734 = vst [vmem:[%s1413_s3 + $0x80] sm:$0xff] %v670_v24  ;;  %766 = vst [vmem:[%s1413_s3 + $0x180] sm:$0xff] %v702_v25  ;;  %v671_v30 = vmax.f32 %v467_v26, 0.0  ;;  %v703_v31 = vmax.f32 %v595_v27, 0.0 }
 0x104   :  { %737 = vst [vmem:[%s1413_s3 + $0x98] sm:$0xff] %v673_v28  ;;  %769 = vst [vmem:[%s1413_s3 + $0x198] sm:$0xff] %v705_v29 }
 0x105   :  { %735 = vst [vmem:[%s1413_s3 + $0x88] sm:$0xff] %v671_v30  ;;  %767 = vst [vmem:[%s1413_s3 + $0x188] sm:$0xff] %v703_v31  ;;  %v913_v32 = vpop.f32.mrb[20].mxu0  ;;  %v945_v33 = vpop.f32.mrb[20].mxu1 }
 0x106   :  { %v488_v34 = vadd.f32 %v913_v32, %v1152_v38  ;;  %v616_v35 = vadd.f32 %v945_v33, %v1152_v38  ;;  %v479_v36 = vpop.f32.mrb[21].mxu0  ;;  %v607_v37 = vpop.f32.mrb[21].mxu1 }
 0x107   :  { %v480_v39 = vadd.f32 %v1152_v38, %v479_v36  ;;  %v608_v40 = vadd.f32 %v1152_v38, %v607_v37  ;;  %v914_v41 = vpop.f32.mrb[22].mxu0  ;;  %v946_v42 = vpop.f32.mrb[22].mxu1 }
 0x108   :  { %v676_v43 = vmax.f32 %v488_v34, 0.0  ;;  %v708_v44 = vmax.f32 %v616_v35, 0.0  ;;  %v491_v45 = vadd.f32 %v914_v41, %v1152_v38  ;;  %v619_v46 = vadd.f32 %v946_v42, %v1152_v38  ;;  %v482_v47 = vpop.f32.mrb[23].mxu0  ;;  %v610_v48 = vpop.f32.mrb[23].mxu1 }
 0x109   :  { %v674_v49 = vmax.f32 %v480_v39, 0.0  ;;  %v706_v50 = vmax.f32 %v608_v40, 0.0  ;;  %v483_v51 = vadd.f32 %v1152_v38, %v482_v47  ;;  %v611_v52 = vadd.f32 %v1152_v38, %v610_v48 }
 0x10a   :  { %740 = vst [vmem:[%s1413_s3 + $0xb0] sm:$0xff] %v676_v43  ;;  %772 = vst [vmem:[%s1413_s3 + $0x1b0] sm:$0xff] %v708_v44  ;;  %v677_v53 = vmax.f32 %v491_v45, 0.0  ;;  %v709_v54 = vmax.f32 %v619_v46, 0.0 }
 0x10b   :  { %738 = vst [vmem:[%s1413_s3 + $0xa0] sm:$0xff] %v674_v49  ;;  %770 = vst [vmem:[%s1413_s3 + $0x1a0] sm:$0xff] %v706_v50  ;;  %v675_v55 = vmax.f32 %v483_v51, 0.0  ;;  %v707_v56 = vmax.f32 %v611_v52, 0.0 }
 0x10c   :  { %741 = vst [vmem:[%s1413_s3 + $0xb8] sm:$0xff] %v677_v53  ;;  %773 = vst [vmem:[%s1413_s3 + $0x1b8] sm:$0xff] %v709_v54 }
 0x10d   :  { %739 = vst [vmem:[%s1413_s3 + $0xa8] sm:$0xff] %v675_v55  ;;  %771 = vst [vmem:[%s1413_s3 + $0x1a8] sm:$0xff] %v707_v56  ;;  %v917_v57 = vpop.f32.mrb[24].mxu0  ;;  %v949_v58 = vpop.f32.mrb[24].mxu1 }
 0x10e   :  { %v504_v59 = vadd.f32 %v917_v57, %v1152_v38  ;;  %v632_v60 = vadd.f32 %v949_v58, %v1152_v38  ;;  %v495_v61 = vpop.f32.mrb[25].mxu0  ;;  %v623_v62 = vpop.f32.mrb[25].mxu1 }
 0x10f   :  { %v496_v63 = vadd.f32 %v1152_v38, %v495_v61  ;;  %v624_v0 = vadd.f32 %v1152_v38, %v623_v62  ;;  %v918_v1 = vpop.f32.mrb[26].mxu0  ;;  %v950_v2 = vpop.f32.mrb[26].mxu1 }
 0x110   :  { %v680_v3 = vmax.f32 %v504_v59, 0.0  ;;  %v712_v4 = vmax.f32 %v632_v60, 0.0  ;;  %v507_v5 = vadd.f32 %v918_v1, %v1152_v38  ;;  %v635_v6 = vadd.f32 %v950_v2, %v1152_v38  ;;  %v498_v7 = vpop.f32.mrb[27].mxu0  ;;  %v626_v8 = vpop.f32.mrb[27].mxu1 }
 0x111   :  { %v678_v9 = vmax.f32 %v496_v63, 0.0  ;;  %v710_v10 = vmax.f32 %v624_v0, 0.0  ;;  %v499_v11 = vadd.f32 %v1152_v38, %v498_v7  ;;  %v627_v12 = vadd.f32 %v1152_v38, %v626_v8 }
 0x112   :  { %744 = vst [vmem:[%s1413_s3 + $0xd0] sm:$0xff] %v680_v3  ;;  %776 = vst [vmem:[%s1413_s3 + $0x1d0] sm:$0xff] %v712_v4  ;;  %v681_v13 = vmax.f32 %v507_v5, 0.0  ;;  %v713_v14 = vmax.f32 %v635_v6, 0.0 }
 0x113   :  { %742 = vst [vmem:[%s1413_s3 + $0xc0] sm:$0xff] %v678_v9  ;;  %774 = vst [vmem:[%s1413_s3 + $0x1c0] sm:$0xff] %v710_v10  ;;  %v679_v15 = vmax.f32 %v499_v11, 0.0  ;;  %v711_v16 = vmax.f32 %v627_v12, 0.0 }
 0x114   :  { %745 = vst [vmem:[%s1413_s3 + $0xd8] sm:$0xff] %v681_v13  ;;  %777 = vst [vmem:[%s1413_s3 + $0x1d8] sm:$0xff] %v713_v14 }
 0x115   :  { %743 = vst [vmem:[%s1413_s3 + $0xc8] sm:$0xff] %v679_v15  ;;  %775 = vst [vmem:[%s1413_s3 + $0x1c8] sm:$0xff] %v711_v16  ;;  %v921_v17 = vpop.f32.mrb[28].mxu0  ;;  %v953_v18 = vpop.f32.mrb[28].mxu1 }
 0x116   :  { %v520_v19 = vadd.f32 %v921_v17, %v1152_v38  ;;  %v648_v20 = vadd.f32 %v953_v18, %v1152_v38  ;;  %v511_v21 = vpop.f32.mrb[29].mxu0  ;;  %v639_v22 = vpop.f32.mrb[29].mxu1 }
 0x117   :  { %v512_v23 = vadd.f32 %v1152_v38, %v511_v21  ;;  %v640_v24 = vadd.f32 %v1152_v38, %v639_v22  ;;  %v922_v25 = vpop.f32.mrb[30].mxu0  ;;  %v954_v26 = vpop.f32.mrb[30].mxu1 }
 0x118   :  { %v684_v27 = vmax.f32 %v520_v19, 0.0  ;;  %v716_v28 = vmax.f32 %v648_v20, 0.0  ;;  %v523_v29 = vadd.f32 %v922_v25, %v1152_v38  ;;  %v651_v30 = vadd.f32 %v954_v26, %v1152_v38  ;;  %v514_v31 = vpop.f32.mrb[31].mxu0  ;;  %v642_v32 = vpop.f32.mrb[31].mxu1 }
 0x119   :  { %v682_v33 = vmax.f32 %v512_v23, 0.0  ;;  %v714_v34 = vmax.f32 %v640_v24, 0.0  ;;  %v515_v35 = vadd.f32 %v1152_v38, %v514_v31  ;;  %v643_v36 = vadd.f32 %v1152_v38, %v642_v32 }
 0x11a   :  { %748 = vst [vmem:[%s1413_s3 + $0xf0] sm:$0xff] %v684_v27  ;;  %780 = vst [vmem:[%s1413_s3 + $0x1f0] sm:$0xff] %v716_v28  ;;  %v685_v37 = vmax.f32 %v523_v29, 0.0  ;;  %v717_v39 = vmax.f32 %v651_v30, 0.0 }
 0x11b   :  { %746 = vst [vmem:[%s1413_s3 + $0xe0] sm:$0xff] %v682_v33  ;;  %778 = vst [vmem:[%s1413_s3 + $0x1e0] sm:$0xff] %v714_v34  ;;  %v683_v40 = vmax.f32 %v515_v35, 0.0  ;;  %v715_v38 = vmax.f32 %v643_v36, 0.0 }
 0x11c   :  { %749 = vst [vmem:[%s1413_s3 + $0xf8] sm:$0xff] %v685_v37  ;;  %781 = vst [vmem:[%s1413_s3 + $0x1f8] sm:$0xff] %v717_v39 }
 0x11d   :  { %747 = vst [vmem:[%s1413_s3 + $0xe8] sm:$0xff] %v683_v40  ;;  %779 = vst [vmem:[%s1413_s3 + $0x1e8] sm:$0xff] %v715_v38 }

// kernel: network_forward.7
= control target key start
LH: loop header
LB: loop body
LE: loop exit
PB: predicated region body
PF: predicated region fallthrough
CT: control target
= control target key end

     0   :  { %vm114_vm0 = vcmask 588800   ;;  %vm139_vm1 = vcmask 1043456   ;;  %s480_s1 = inlined_call_operand.vmem [shape: bf16[72,128], index: 1, kind: input, shape index: {}]   ;;  %s481_s0 = inlined_call_operand.vmem [shape: bf16[128,72], index: 0, kind: input, shape index: {}]   ;;  %s482_s2 = inlined_call_operand.vmem [shape: f32[1,128], index: 2, kind: input, shape index: {}]   ;;  %s483_s3 = inlined_call_operand.vmem [shape: f32[128,128], index: 3, kind: output, shape index: {}]  }
   0x1   :  { %v349_v0 = vld [vmem:[%s480_s1] sm:$0xff]   ;;  %v350_v1 = vld [vmem:[%s480_s1 + $0x8] sm:$0xff]   ;;  %v351_v2 = vld [vmem:[%s480_s1 + $0x10] sm:$0xff]  }
   0x2   :  { %311 = vmatprep.subr.bf16.mxu0 %v349_v0  ;;  %337 = vmatprep.subr.bf16.mxu1 %v349_v0  ;;  %v354_v3 = vld [vmem:[%s481_s0] sm:$0xff]   ;;  %v352_v5 = vld [vmem:[%s480_s1 + $0x18] sm:$0xff]   ;;  %v356_v8 = vld [vmem:[%s481_s0 + $0x8] sm:$0xff]  }
   0x3   :  { %312 = vmatpush3.bf16.msra.mxu0 %v349_v0  ;;  %342 = vmatpush3.bf16.msra.mxu1 %v349_v0  ;;  %v355_v4 = vld [vmem:[%s481_s0 + $0x20] sm:$0xff]   ;;  %v357_v9 = vld [vmem:[%s481_s0 + $0x28] sm:$0xff]   ;;  %v358_v10 = vld [vmem:[%s481_s0 + $0x10] sm:$0xff]  }
   0x4   :  { %313 = vmatprep.subr.bf16.mxu0 %v350_v1  ;;  %338 = vmatprep.subr.bf16.mxu1 %v350_v1  ;;  %v353_v6 = vld [vmem:[%s480_s1 + $0x20] ss:$0 sps:$4 sm:$0xff]   ;;  %v359_v11 = vld [vmem:[%s481_s0 + $0x30] sm:$0xff]   ;;  %v360_v12 = vld [vmem:[%s481_s0 + $0x18] sm:$0xff]  }
   0x5   :  { %321 = vmatprep.mubr.msk.bf16.mxu0 %vm114_vm0, %v354_v3  ;;  %329 = vmatprep.mubr.msk.bf16.mxu1 %vm114_vm0, %v355_v4  ;;  %v141_v7 = vsel %vm139_vm1, %v353_v6, 0  ;;  %v361_v13 = vld [vmem:[%s481_s0 + $0x38] sm:$0xff]   ;;  %v276_v14 = vld [vmem:[%s482_s2] ss:$0 sm:$0xff] }
   0x7   :  { %314 = vmatpush3.bf16.msra.mxu0 %v350_v1  ;;  %343 = vmatpush3.bf16.msra.mxu1 %v350_v1 }
   0x8   :  { %315 = vmatprep.subr.bf16.mxu0 %v351_v2  ;;  %339 = vmatprep.subr.bf16.mxu1 %v351_v2 }
   0xb   :  { %316 = vmatpush3.bf16.msra.mxu0 %v351_v2  ;;  %344 = vmatpush3.bf16.msra.mxu1 %v351_v2 }
   0xc   :  { %317 = vmatprep.subr.bf16.mxu0 %v352_v5  ;;  %340 = vmatprep.subr.bf16.mxu1 %v352_v5 }
   0xf   :  { %318 = vmatpush3.bf16.msra.mxu0 %v352_v5  ;;  %345 = vmatpush3.bf16.msra.mxu1 %v352_v5 }
  0x10   :  { %347 = vmatprep.subr.msk.bf16.mxu0 %vm139_vm1, %v353_v6  ;;  %348 = vmatprep.subr.msk.bf16.mxu1 %vm139_vm1, %v353_v6 }
  0x13   :  { %320 = vmatpush3.bf16.msra.mxu0 %v141_v7  ;;  %346 = vmatpush3.bf16.msra.mxu1 %v141_v7 }
  0x16   :  { %322 = vmatmul.mubr.msk.bf16.vlgmr.msra.gmra.mrb[0].mxu0 %vm114_vm0, %v356_v8  ;;  %330 = vmatmul.mubr.msk.bf16.vlgmr.msra.gmra.mrb[0].mxu1 %vm114_vm0, %v357_v9 }
  0x17   :  { %325 = vmatprep.mubr.msk.bf16.mxu0 %vm114_vm0, %v358_v10  ;;  %333 = vmatprep.mubr.msk.bf16.mxu1 %vm114_vm0, %v359_v11 }
  0x1e   :  { %326 = vmatmul.mubr.msk.bf16.gmra.mrb[4].mxu0 %vm114_vm0, %v360_v12  ;;  %334 = vmatmul.mubr.msk.bf16.gmra.mrb[4].mxu1 %vm114_vm0, %v361_v13 }
  0xe9   :  { %v323_v15 = vpop.f32.mrb[0].mxu0  ;;  %v331_v16 = vpop.f32.mrb[0].mxu1 }
  0xea   :  { %v186_v17 = vadd.f32 %v323_v15, %v276_v14  ;;  %v218_v18 = vadd.f32 %v331_v16, %v276_v14  ;;  %v177_v19 = vpop.f32.mrb[1].mxu0  ;;  %v209_v20 = vpop.f32.mrb[1].mxu1 }
  0xeb   :  { %v178_v21 = vadd.f32 %v276_v14, %v177_v19  ;;  %v210_v22 = vadd.f32 %v276_v14, %v209_v20  ;;  %v324_v23 = vpop.f32.mrb[2].mxu0  ;;  %v332_v24 = vpop.f32.mrb[2].mxu1 }
  0xec   :  { %v242_v25 = vmax.f32 %v186_v17, 0.0  ;;  %v250_v26 = vmax.f32 %v218_v18, 0.0  ;;  %v189_v27 = vadd.f32 %v324_v23, %v276_v14  ;;  %v221_v28 = vadd.f32 %v332_v24, %v276_v14  ;;  %v180_v29 = vpop.f32.mrb[3].mxu0  ;;  %v212_v30 = vpop.f32.mrb[3].mxu1 }
  0xed   :  { %v240_v31 = vmax.f32 %v178_v21, 0.0  ;;  %v248_v32 = vmax.f32 %v210_v22, 0.0  ;;  %v181_v33 = vadd.f32 %v276_v14, %v180_v29  ;;  %v213_v34 = vadd.f32 %v276_v14, %v212_v30 }
  0xee   :  { %258 = vst [vmem:[%s483_s3 + $0x10] sm:$0xff] %v242_v25  ;;  %266 = vst [vmem:[%s483_s3 + $0x50] sm:$0xff] %v250_v26  ;;  %v243_v35 = vmax.f32 %v189_v27, 0.0  ;;  %v251_v36 = vmax.f32 %v221_v28, 0.0 }
  0xef   :  { %256 = vst [vmem:[%s483_s3] sm:$0xff] %v240_v31  ;;  %264 = vst [vmem:[%s483_s3 + $0x40] sm:$0xff] %v248_v32  ;;  %v241_v37 = vmax.f32 %v181_v33, 0.0  ;;  %v249_v38 = vmax.f32 %v213_v34, 0.0 }
  0xf0   :  { %259 = vst [vmem:[%s483_s3 + $0x18] sm:$0xff] %v243_v35  ;;  %267 = vst [vmem:[%s483_s3 + $0x58] sm:$0xff] %v251_v36 }
  0xf1   :  { %257 = vst [vmem:[%s483_s3 + $0x8] sm:$0xff] %v241_v37  ;;  %265 = vst [vmem:[%s483_s3 + $0x48] sm:$0xff] %v249_v38  ;;  %v327_v39 = vpop.f32.mrb[4].mxu0  ;;  %v335_v40 = vpop.f32.mrb[4].mxu1 }
  0xf2   :  { %v202_v41 = vadd.f32 %v327_v39, %v276_v14  ;;  %v234_v42 = vadd.f32 %v335_v40, %v276_v14  ;;  %v193_v43 = vpop.f32.mrb[5].mxu0  ;;  %v225_v44 = vpop.f32.mrb[5].mxu1 }
  0xf3   :  { %v194_v45 = vadd.f32 %v276_v14, %v193_v43  ;;  %v226_v46 = vadd.f32 %v276_v14, %v225_v44  ;;  %v328_v47 = vpop.f32.mrb[6].mxu0  ;;  %v336_v48 = vpop.f32.mrb[6].mxu1 }
  0xf4   :  { %v246_v49 = vmax.f32 %v202_v41, 0.0  ;;  %v254_v50 = vmax.f32 %v234_v42, 0.0  ;;  %v205_v51 = vadd.f32 %v328_v47, %v276_v14  ;;  %v237_v52 = vadd.f32 %v336_v48, %v276_v14  ;;  %v196_v53 = vpop.f32.mrb[7].mxu0  ;;  %v228_v54 = vpop.f32.mrb[7].mxu1 }
  0xf5   :  { %v244_v55 = vmax.f32 %v194_v45, 0.0  ;;  %v252_v56 = vmax.f32 %v226_v46, 0.0  ;;  %v197_v57 = vadd.f32 %v276_v14, %v196_v53  ;;  %v229_v58 = vadd.f32 %v276_v14, %v228_v54 }
  0xf6   :  { %262 = vst [vmem:[%s483_s3 + $0x30] sm:$0xff] %v246_v49  ;;  %270 = vst [vmem:[%s483_s3 + $0x70] sm:$0xff] %v254_v50  ;;  %v247_v59 = vmax.f32 %v205_v51, 0.0  ;;  %v255_v60 = vmax.f32 %v237_v52, 0.0 }
  0xf7   :  { %260 = vst [vmem:[%s483_s3 + $0x20] sm:$0xff] %v244_v55  ;;  %268 = vst [vmem:[%s483_s3 + $0x60] sm:$0xff] %v252_v56  ;;  %v245_v61 = vmax.f32 %v197_v57, 0.0  ;;  %v253_v62 = vmax.f32 %v229_v58, 0.0 }
  0xf8   :  { %263 = vst [vmem:[%s483_s3 + $0x38] sm:$0xff] %v247_v59  ;;  %271 = vst [vmem:[%s483_s3 + $0x78] sm:$0xff] %v255_v60 }
  0xf9   :  { %261 = vst [vmem:[%s483_s3 + $0x28] sm:$0xff] %v245_v61  ;;  %269 = vst [vmem:[%s483_s3 + $0x68] sm:$0xff] %v253_v62 }

// kernel: network_forward.8
= control target key start
LH: loop header
LB: loop body
LE: loop exit
PB: predicated region body
PF: predicated region fallthrough
CT: control target
= control target key end

     0   :  { %v666_v0 = vmov 0   ;;  %vm191_vm0 = vcmask 130048   ;;  %s902_s1 = inlined_call_operand.vmem [shape: bf16[144,128], index: 1, kind: input, shape index: {}]   ;;  %s903_s0 = inlined_call_operand.vmem [shape: bf16[128,144], index: 0, kind: input, shape index: {}]   ;;  %s904_s4 = inlined_call_operand.vmem [shape: bf16[128,128], index: 4, kind: input, shape index: {}]   ;;  %s905_s2 = inlined_call_operand.vmem [shape: f32[1,128], index: 2, kind: input, shape index: {}]   ;;  %s906_s3 = inlined_call_operand.vmem [shape: f32[1,128], index: 3, kind: input, shape index: {}]   ;;  %s907_s5 = inlined_call_operand.vmem [shape: f32[1,128], index: 5, kind: input, shape index: {}]   ;;  %s908_s6 = inlined_call_operand.vmem [shape: f32[128,128], index: 6, kind: output, shape index: {}]  }
   0x1   :  { %216 = vmatprep.subr.bf16.mxu0 %v666_v0  ;;  %v625_v1 = vld [vmem:[%s902_s1] sm:$0xff]   ;;  %v626_v2 = vld [vmem:[%s902_s1 + $0x8] sm:$0xff]   ;;  %v627_v3 = vld [vmem:[%s902_s1 + $0x10] sm:$0xff]  }
   0x2   :  { %217 = vmatpush1.bf16.msra.mxu0 %v625_v1  ;;  %v628_v4 = vld [vmem:[%s902_s1 + $0x18] sm:$0xff]   ;;  %v636_v5 = vld [vmem:[%s903_s0 + $0x4] ss:$8 sps:$4 sm:$0xff]   ;;  %v631_v10 = vld [vmem:[%s902_s1 + $0x30] sm:$0xff]  }
   0x3   :  { %218 = vmatprep.subr.bf16.mxu0 %v666_v0  ;;  %558 = vmatprep.mubr.msk.bf16.mxu0 %vm191_vm0, %v636_v5  ;;  %v629_v6 = vld [vmem:[%s902_s1 + $0x20] sm:$0xff]   ;;  %v630_v7 = vld [vmem:[%s902_s1 + $0x28] sm:$0xff]   ;;  %v660_v11 = vld [vmem:[%s904_s4 + $0x10] sm:$0xff]  }
   0x4   :  { %v658_v8 = vld [vmem:[%s904_s4] sm:$0xff]   ;;  %v659_v9 = vld [vmem:[%s904_s4 + $0x8] sm:$0xff]   ;;  %v632_v12 = vld [vmem:[%s902_s1 + $0x38] sm:$0xff]  }
   0x5   :  { %592 = vmatprep.subr.bf16.mxu1 %v658_v8  ;;  %v661_v13 = vld [vmem:[%s904_s4 + $0x18] sm:$0xff]   ;;  %v633_v14 = vld [vmem:[%s902_s1 + $0x40] sm:$0xff]   ;;  %v663_v31 = vld [vmem:[%s904_s4 + $0x28] sm:$0xff]  }
   0x6   :  { %219 = vmatpush1.bf16.msra.mxu0 %v626_v2  ;;  %593 = vmatpush3.bf16.msra.mxu1 %v658_v8  ;;  %v634_v15 = vld [vmem:[%s903_s0] ss:$8 sps:$4 sm:$0xff]   ;;  %v637_v16 = vld [vmem:[%s903_s0 + $0x14] ss:$8 sps:$4 sm:$0xff]   ;;  %v639_v17 = vld [vmem:[%s903_s0 + $0x10] ss:$8 sps:$4 sm:$0xff]  }
   0x7   :  { %220 = vmatprep.subr.bf16.mxu0 %v666_v0  ;;  %594 = vmatprep.subr.bf16.mxu1 %v659_v9  ;;  %v640_v18 = vld [vmem:[%s903_s0 + $0x24] ss:$8 sps:$4 sm:$0xff]   ;;  %v642_v19 = vld [vmem:[%s903_s0 + $0x20] ss:$8 sps:$4 sm:$0xff]   ;;  %v643_v20 = vld [vmem:[%s903_s0 + $0x34] ss:$8 sps:$4 sm:$0xff]  }
   0x8   :  { %v645_v21 = vld [vmem:[%s903_s0 + $0x30] ss:$8 sps:$4 sm:$0xff]   ;;  %v646_v22 = vld [vmem:[%s903_s0 + $0x44] ss:$8 sps:$4 sm:$0xff]   ;;  %v648_v23 = vld [vmem:[%s903_s0 + $0x40] ss:$8 sps:$4 sm:$0xff]  }
   0x9   :  { %v649_v24 = vld [vmem:[%s903_s0 + $0x54] ss:$8 sps:$4 sm:$0xff]   ;;  %v651_v25 = vld [vmem:[%s903_s0 + $0x50] ss:$8 sps:$4 sm:$0xff]   ;;  %v652_v26 = vld [vmem:[%s903_s0 + $0x64] ss:$8 sps:$4 sm:$0xff]  }
   0xa   :  { %221 = vmatpush1.bf16.msra.mxu0 %v627_v3  ;;  %595 = vmatpush3.bf16.msra.mxu1 %v659_v9  ;;  %v654_v27 = vld [vmem:[%s903_s0 + $0x60] ss:$8 sps:$4 sm:$0xff]   ;;  %v655_v28 = vld [vmem:[%s903_s0 + $0x74] ss:$8 sps:$4 sm:$0xff]   ;;  %v657_v29 = vld [vmem:[%s903_s0 + $0x70] ss:$8 sps:$4 sm:$0xff]  }
   0xb   :  { %222 = vmatprep.subr.bf16.mxu0 %v666_v0  ;;  %596 = vmatprep.subr.bf16.mxu1 %v660_v11  ;;  %v662_v30 = vld [vmem:[%s904_s4 + $0x20] sm:$0xff]   ;;  %v664_v32 = vld [vmem:[%s904_s4 + $0x30] sm:$0xff]   ;;  %v665_v33 = vld [vmem:[%s904_s4 + $0x38] sm:$0xff]  }
   0xc   :  { %v812_v34 = vld [vmem:[%s905_s2] ss:$0 sm:$0xff] }
   0xd   :  { %v818_v39 = vld [vmem:[%s906_s3] ss:$0 sm:$0xff] }
   0xe   :  { %223 = vmatpush1.bf16.msra.mxu0 %v628_v4  ;;  %597 = vmatpush3.bf16.msra.mxu1 %v660_v11 }
   0xf   :  { %224 = vmatprep.subr.bf16.mxu0 %v666_v0  ;;  %598 = vmatprep.subr.bf16.mxu1 %v661_v13 }
  0x12   :  { %225 = vmatpush1.bf16.msra.mxu0 %v629_v6  ;;  %599 = vmatpush3.bf16.msra.mxu1 %v661_v13 }
  0x13   :  { %226 = vmatprep.subr.bf16.mxu0 %v666_v0  ;;  %600 = vmatprep.subr.bf16.mxu1 %v662_v30 }
  0x16   :  { %227 = vmatpush1.bf16.msra.mxu0 %v630_v7  ;;  %601 = vmatpush3.bf16.msra.mxu1 %v662_v30 }
  0x17   :  { %228 = vmatprep.subr.bf16.mxu0 %v666_v0  ;;  %602 = vmatprep.subr.bf16.mxu1 %v663_v31 }
  0x1a   :  { %229 = vmatpush1.bf16.msra.mxu0 %v631_v10  ;;  %603 = vmatpush3.bf16.msra.mxu1 %v663_v31 }
  0x1b   :  { %230 = vmatprep.subr.bf16.mxu0 %v666_v0  ;;  %604 = vmatprep.subr.bf16.mxu1 %v664_v32 }
  0x1e   :  { %231 = vmatpush1.bf16.msra.mxu0 %v632_v12  ;;  %605 = vmatpush3.bf16.msra.mxu1 %v664_v32 }
  0x1f   :  { %232 = vmatprep.subr.bf16.mxu0 %v666_v0  ;;  %606 = vmatprep.subr.bf16.mxu1 %v665_v33 }
  0x22   :  { %233 = vmatpush1.bf16.msra.mxu0 %v633_v14  ;;  %607 = vmatpush3.bf16.msra.mxu1 %v665_v33 }
  0x25   :  { %249 = vmatmul.mubr.bf16.vlgmr.msra.gmra.mrb[0].mxu0 %v634_v15 }
  0x26   :  { %559 = vmatprep.mubr.msk.bf16.mxu0 %vm191_vm0, %v637_v16 }
  0x2d   :  { %257 = vmatmul.mubr.bf16.gmra.mrb[4].mxu0 %v639_v17 }
  0x2e   :  { %560 = vmatprep.mubr.msk.bf16.mxu0 %vm191_vm0, %v640_v18 }
  0x35   :  { %265 = vmatmul.mubr.bf16.gmra.mrb[8].mxu0 %v642_v19 }
  0x36   :  { %561 = vmatprep.mubr.msk.bf16.mxu0 %vm191_vm0, %v643_v20 }
  0x3d   :  { %273 = vmatmul.mubr.bf16.gmra.mrb[12].mxu0 %v645_v21 }
  0x3e   :  { %562 = vmatprep.mubr.msk.bf16.mxu0 %vm191_vm0, %v646_v22 }
  0x45   :  { %281 = vmatmul.mubr.bf16.gmra.mrb[16].mxu0 %v648_v23 }
  0x46   :  { %563 = vmatprep.mubr.msk.bf16.mxu0 %vm191_vm0, %v649_v24 }
  0x4d   :  { %289 = vmatmul.mubr.bf16.gmra.mrb[20].mxu0 %v651_v25 }
  0x4e   :  { %564 = vmatprep.mubr.msk.bf16.mxu0 %vm191_vm0, %v652_v26 }
  0x55   :  { %297 = vmatmul.mubr.bf16.gmra.mrb[24].mxu0 %v654_v27 }
  0x56   :  { %565 = vmatprep.mubr.msk.bf16.mxu0 %vm191_vm0, %v655_v28 }
  0x5d   :  { %305 = vmatmul.mubr.bf16.gmra.mrb[28].mxu0 %v657_v29 }
  0xf8   :  { %v250_v35 = vpop.f32.mrb[0].mxu0 }
  0xf9   :  { %v251_v36 = vadd.f32 %v812_v34, %v250_v35  ;;  %v252_v37 = vpop.f32.mrb[1].mxu0 }
  0xfa   :  { %v253_v38 = vpop.f32.mrb[2].mxu0 }
  0xfb   :  { %v254_v40 = vadd.f32 %v812_v34, %v253_v38  ;;  %v255_v41 = vpop.f32.mrb[3].mxu0  ;;  %v320_v42 = vmax.f32 %v251_v36, %v818_v39 }
  0xfd   :  { %v321_v43 = vmax.f32 %v254_v40, %v818_v39 }
  0xff   :  { %v336_v44 = vpack.c.bf16 %v321_v43, %v320_v42 }
 0x100   :  { %v258_v45 = vpop.f32.mrb[4].mxu0 }
 0x101   :  { %v259_v46 = vadd.f32 %v812_v34, %v258_v45  ;;  %v260_v47 = vpop.f32.mrb[5].mxu0  ;;  %608 = vmatprep.mubr.bf16.mxu1 %v336_v44 }
 0x102   :  { %v261_v48 = vpop.f32.mrb[6].mxu0 }
 0x103   :  { %v262_v49 = vadd.f32 %v812_v34, %v261_v48  ;;  %v263_v50 = vpop.f32.mrb[7].mxu0  ;;  %v322_v51 = vmax.f32 %v259_v46, %v818_v39  ;;  %v567_v46 = vld [vmem:[%s907_s5] ss:$0 sm:$0xff] }
 0x105   :  { %v323_v52 = vmax.f32 %v262_v49, %v818_v39 }
 0x107   :  { %v337_v53 = vpack.c.bf16 %v323_v52, %v322_v51 }
 0x108   :  { %v266_v54 = vpop.f32.mrb[8].mxu0 }
 0x109   :  { %v267_v55 = vadd.f32 %v812_v34, %v266_v54  ;;  %v268_v56 = vpop.f32.mrb[9].mxu0  ;;  %609 = vmatmul.mubr.bf16.vlgmr.msra.gmra.mrb[0].mxu1 %v337_v53 }
 0x10a   :  { %v269_v57 = vpop.f32.mrb[10].mxu0 }
 0x10b   :  { %v270_v58 = vadd.f32 %v812_v34, %v269_v57  ;;  %v271_v59 = vpop.f32.mrb[11].mxu0  ;;  %v324_v60 = vmax.f32 %v267_v55, %v818_v39 }
 0x10d   :  { %v325_v61 = vmax.f32 %v270_v58, %v818_v39 }
 0x10f   :  { %v338_v62 = vpack.c.bf16 %v325_v61, %v324_v60 }
 0x110   :  { %v274_v63 = vpop.f32.mrb[12].mxu0 }
 0x111   :  { %v275_v0 = vadd.f32 %v812_v34, %v274_v63  ;;  %v276_v1 = vpop.f32.mrb[13].mxu0  ;;  %612 = vmatprep.mubr.bf16.mxu1 %v338_v62 }
 0x112   :  { %v277_v2 = vpop.f32.mrb[14].mxu0 }
 0x113   :  { %v278_v3 = vadd.f32 %v812_v34, %v277_v2  ;;  %v279_v4 = vpop.f32.mrb[15].mxu0  ;;  %v326_v5 = vmax.f32 %v275_v0, %v818_v39 }
 0x115   :  { %v327_v6 = vmax.f32 %v278_v3, %v818_v39 }
 0x117   :  { %v339_v7 = vpack.c.bf16 %v327_v6, %v326_v5 }
 0x118   :  { %v282_v8 = vpop.f32.mrb[16].mxu0 }
 0x119   :  { %v283_v9 = vadd.f32 %v812_v34, %v282_v8  ;;  %v284_v10 = vpop.f32.mrb[17].mxu0  ;;  %613 = vmatmul.mubr.bf16.gmra.mrb[4].mxu1 %v339_v7 }
 0x11a   :  { %v285_v11 = vpop.f32.mrb[18].mxu0 }
 0x11b   :  { %v286_v12 = vadd.f32 %v812_v34, %v285_v11  ;;  %v287_v13 = vpop.f32.mrb[19].mxu0  ;;  %v328_v14 = vmax.f32 %v283_v9, %v818_v39 }
 0x11d   :  { %v329_v15 = vmax.f32 %v286_v12, %v818_v39 }
 0x11f   :  { %v340_v16 = vpack.c.bf16 %v329_v15, %v328_v14 }
 0x120   :  { %v290_v17 = vpop.f32.mrb[20].mxu0 }
 0x121   :  { %v291_v18 = vadd.f32 %v812_v34, %v290_v17  ;;  %v292_v19 = vpop.f32.mrb[21].mxu0  ;;  %616 = vmatprep.mubr.bf16.mxu1 %v340_v16 }
 0x122   :  { %v293_v20 = vpop.f32.mrb[22].mxu0 }
 0x123   :  { %v294_v21 = vadd.f32 %v812_v34, %v293_v20  ;;  %v295_v22 = vpop.f32.mrb[23].mxu0  ;;  %v330_v23 = vmax.f32 %v291_v18, %v818_v39 }
 0x125   :  { %v331_v24 = vmax.f32 %v294_v21, %v818_v39 }
 0x127   :  { %v341_v25 = vpack.c.bf16 %v331_v24, %v330_v23 }
 0x128   :  { %v298_v26 = vpop.f32.mrb[24].mxu0 }
 0x129   :  { %v299_v27 = vadd.f32 %v812_v34, %v298_v26  ;;  %v300_v28 = vpop.f32.mrb[25].mxu0  ;;  %617 = vmatmul.mubr.bf16.gmra.mrb[8].mxu1 %v341_v25 }
 0x12a   :  { %v301_v29 = vpop.f32.mrb[26].mxu0 }
 0x12b   :  { %v302_v30 = vadd.f32 %v812_v34, %v301_v29  ;;  %v303_v31 = vpop.f32.mrb[27].mxu0  ;;  %v332_v32 = vmax.f32 %v299_v27, %v818_v39 }
 0x12d   :  { %v333_v33 = vmax.f32 %v302_v30, %v818_v39 }
 0x12f   :  { %v342_v35 = vpack.c.bf16 %v333_v33, %v332_v32 }
 0x130   :  { %v306_v36 = vpop.f32.mrb[28].mxu0 }
 0x131   :  { %v307_v37 = vadd.f32 %v812_v34, %v306_v36  ;;  %v308_v38 = vpop.f32.mrb[29].mxu0  ;;  %620 = vmatprep.mubr.bf16.mxu1 %v342_v35 }
 0x132   :  { %v309_v40 = vpop.f32.mrb[30].mxu0 }
 0x133   :  { %v310_v41 = vadd.f32 %v812_v34, %v309_v40  ;;  %v311_v42 = vpop.f32.mrb[31].mxu0  ;;  %v334_v43 = vmax.f32 %v307_v37, %v818_v39 }
 0x135   :  { %v335_v44 = vmax.f32 %v310_v41, %v818_v39 }
 0x137   :  { %v343_v45 = vpack.c.bf16 %v335_v44, %v334_v43 }
 0x139   :  { %621 = vmatmul.mubr.bf16.gmra.mrb[12].mxu1 %v343_v45 }
 0x1dc   :  { %v610_v47 = vpop.f32.mrb[0].mxu1 }
 0x1dd   :  { %v458_v48 = vadd.f32 %v610_v47, %v567_v46  ;;  %v449_v49 = vpop.f32.mrb[1].mxu1 }
 0x1de   :  { %v450_v50 = vadd.f32 %v567_v46, %v449_v49  ;;  %v611_v51 = vpop.f32.mrb[2].mxu1 }
 0x1df   :  { %514 = vst [vmem:[%s908_s6 + $0x10] sm:$0xff] %v458_v48  ;;  %v461_v34 = vadd.f32 %v611_v51, %v567_v46  ;;  %v452_v52 = vpop.f32.mrb[3].mxu1 }
 0x1e0   :  { %512 = vst [vmem:[%s908_s6] sm:$0xff] %v450_v50  ;;  %v453_v39 = vadd.f32 %v567_v46, %v452_v52 }
 0x1e1   :  { %515 = vst [vmem:[%s908_s6 + $0x18] sm:$0xff] %v461_v34 }
 0x1e2   :  { %513 = vst [vmem:[%s908_s6 + $0x8] sm:$0xff] %v453_v39 }
 0x1ec   :  { %v614_v53 = vpop.f32.mrb[4].mxu1 }
 0x1ed   :  { %v474_v54 = vadd.f32 %v614_v53, %v567_v46  ;;  %v465_v55 = vpop.f32.mrb[5].mxu1 }
 0x1ee   :  { %v466_v56 = vadd.f32 %v567_v46, %v465_v55  ;;  %v615_v57 = vpop.f32.mrb[6].mxu1 }
 0x1ef   :  { %518 = vst [vmem:[%s908_s6 + $0x30] sm:$0xff] %v474_v54  ;;  %v477_v58 = vadd.f32 %v615_v57, %v567_v46  ;;  %v468_v59 = vpop.f32.mrb[7].mxu1 }
 0x1f0   :  { %516 = vst [vmem:[%s908_s6 + $0x20] sm:$0xff] %v466_v56  ;;  %v469_v60 = vadd.f32 %v567_v46, %v468_v59 }
 0x1f1   :  { %519 = vst [vmem:[%s908_s6 + $0x38] sm:$0xff] %v477_v58 }
 0x1f2   :  { %517 = vst [vmem:[%s908_s6 + $0x28] sm:$0xff] %v469_v60 }
 0x1fc   :  { %v618_v61 = vpop.f32.mrb[8].mxu1 }
 0x1fd   :  { %v490_v62 = vadd.f32 %v618_v61, %v567_v46  ;;  %v481_v63 = vpop.f32.mrb[9].mxu1 }
 0x1fe   :  { %v482_v0 = vadd.f32 %v567_v46, %v481_v63  ;;  %v619_v1 = vpop.f32.mrb[10].mxu1 }
 0x1ff   :  { %522 = vst [vmem:[%s908_s6 + $0x50] sm:$0xff] %v490_v62  ;;  %v493_v2 = vadd.f32 %v619_v1, %v567_v46  ;;  %v484_v3 = vpop.f32.mrb[11].mxu1 }
 0x200   :  { %520 = vst [vmem:[%s908_s6 + $0x40] sm:$0xff] %v482_v0  ;;  %v485_v4 = vadd.f32 %v567_v46, %v484_v3 }
 0x201   :  { %523 = vst [vmem:[%s908_s6 + $0x58] sm:$0xff] %v493_v2 }
 0x202   :  { %521 = vst [vmem:[%s908_s6 + $0x48] sm:$0xff] %v485_v4 }
 0x20c   :  { %v622_v5 = vpop.f32.mrb[12].mxu1 }
 0x20d   :  { %v506_v6 = vadd.f32 %v622_v5, %v567_v46  ;;  %v497_v7 = vpop.f32.mrb[13].mxu1 }
 0x20e   :  { %v498_v8 = vadd.f32 %v567_v46, %v497_v7  ;;  %v623_v9 = vpop.f32.mrb[14].mxu1 }
 0x20f   :  { %526 = vst [vmem:[%s908_s6 + $0x70] sm:$0xff] %v506_v6  ;;  %v509_v10 = vadd.f32 %v623_v9, %v567_v46  ;;  %v500_v11 = vpop.f32.mrb[15].mxu1 }
 0x210   :  { %524 = vst [vmem:[%s908_s6 + $0x60] sm:$0xff] %v498_v8  ;;  %v501_v12 = vadd.f32 %v567_v46, %v500_v11 }
 0x211   :  { %527 = vst [vmem:[%s908_s6 + $0x78] sm:$0xff] %v509_v10 }
 0x212   :  { %525 = vst [vmem:[%s908_s6 + $0x68] sm:$0xff] %v501_v12 }

// kernel: network_forward.9
= control target key start
LH: loop header
LB: loop body
LE: loop exit
PB: predicated region body
PF: predicated region fallthrough
CT: control target
= control target key end

     0   :  { %s480_s5 = smov 1   ;;  %vm264_vm0 = vcmask 1040384   ;;  %vm305_vm1 = vcmask 1046528   ;;  %s783_s0 = inlined_call_operand.vmem [shape: f32[8,16,128], index: 0, kind: input, shape index: {}]   ;;  %s784_s1 = inlined_call_operand.vmem [shape: f32[8,16,128], index: 1, kind: output, shape index: {}]  }
   0x1   :  { %v10_v0 = vld [vmem:[%s783_s0 + $0x10] sm:$0xff]  ;;  %v8_v1 = vld [vmem:[%s783_s0] sm:$0xff]  ;;  %v11_v2 = vld [vmem:[%s783_s0 + $0x18] sm:$0xff] }
   0x2   :  { %v26_v3 = vmul.f32 0.5, %v10_v0  ;;  %v24_v4 = vmul.f32 0.5, %v8_v1  ;;  %v27_v5 = vmul.f32 0.5, %v11_v2  ;;  %v9_v6 = vld [vmem:[%s783_s0 + $0x8] sm:$0xff]  ;;  %v12_v8 = vld [vmem:[%s783_s0 + $0x20] sm:$0xff]  ;;  %v15_v10 = vld [vmem:[%s783_s0 + $0x38] sm:$0xff] }
   0x3   :  { %v13_v7 = vld [vmem:[%s783_s0 + $0x28] sm:$0xff]  ;;  %v25_v9 = vmul.f32 0.5, %v9_v6  ;;  %v14_v12 = vld [vmem:[%s783_s0 + $0x30] sm:$0xff]  ;;  %v28_v13 = vmul.f32 0.5, %v12_v8  ;;  %v31_v14 = vmul.f32 0.5, %v15_v10  ;;  %v16_v17 = vld [vmem:[%s783_s0 + $0x40] sm:$0xff] }
   0x4   :  { %448 = vtanh.f32 %v26_v3  ;;  %v29_v11 = vmul.f32 0.5, %v13_v7  ;;  %v30_v15 = vmul.f32 0.5, %v14_v12  ;;  %v17_v16 = vld [vmem:[%s783_s0 + $0x48] sm:$0xff]  ;;  %v32_v19 = vmul.f32 0.5, %v16_v17  ;;  %v19_v20 = vld [vmem:[%s783_s0 + $0x58] sm:$0xff]  ;;  %v18_v21 = vld [vmem:[%s783_s0 + $0x50] sm:$0xff] }
   0x5   :  { %450 = vtanh.f32 %v24_v4  ;;  %v33_v18 = vmul.f32 0.5, %v17_v16  ;;  %v35_v23 = vmul.f32 0.5, %v19_v20  ;;  %v34_v26 = vmul.f32 0.5, %v18_v21  ;;  %v21_v27 = vld [vmem:[%s783_s0 + $0x68] sm:$0xff]  ;;  %v20_v30 = vld [vmem:[%s783_s0 + $0x60] sm:$0xff]  ;;  %v23_v42 = vld [vmem:[%s783_s0 + $0x78] sm:$0xff] }
   0x6   :  { %452 = vtanh.f32 %v27_v5  ;;  %v37_v37 = vmul.f32 0.5, %v21_v27  ;;  %v36_v41 = vmul.f32 0.5, %v20_v30  ;;  %v22_v46 = vld [vmem:[%s783_s0 + $0x70] sm:$0xff]  ;;  %v39_v48 = vmul.f32 0.5, %v23_v42  ;;  %s481_s0 = smov 127  }
   0x7   :  { %454 = vtanh.f32 %v25_v9  ;;  %v38_v51 = vmul.f32 0.5, %v22_v46 }
   0x8   :  { %456 = vtanh.f32 %v29_v11 }
   0x9   :  { %458 = vtanh.f32 %v28_v13 }
   0xa   :  { %460 = vtanh.f32 %v31_v14 }
   0xb   :  { %462 = vtanh.f32 %v30_v15 }
   0xc   :  { %464 = vtanh.f32 %v33_v18 }
   0xd   :  { %466 = vtanh.f32 %v32_v19 }
   0xe   :  { %v449_v22 = vpop.eup %448  ;;  %468 = vtanh.f32 %v35_v23 }
   0xf   :  { %v451_v24 = vpop.eup %450  ;;  %v58_v25 = vadd.f32 1.0, %v449_v22  ;;  %470 = vtanh.f32 %v34_v26 }
  0x10   :  { %v453_v28 = vpop.eup %452  ;;  %v56_v29 = vadd.f32 1.0, %v451_v24  ;;  %472 = vtanh.f32 %v37_v37 }
  0x11   :  { %v455_v31 = vpop.eup %454  ;;  %v534_v32 = vmul.f32 0.5, %v58_v25  ;;  %v59_v33 = vadd.f32 1.0, %v453_v28  ;;  %474 = vtanh.f32 %v36_v41 }
  0x12   :  { %v457_v34 = vpop.eup %456  ;;  %v536_v35 = vmul.f32 0.5, %v56_v29  ;;  %v57_v36 = vadd.f32 1.0, %v455_v31  ;;  %476 = vtanh.f32 %v39_v48 }
  0x13   :  { %v459_v38 = vpop.eup %458  ;;  %108 = vrot.lane.b32.xlu1 %v534_v32, %s480_s5  ;;  %v540_v39 = vmul.f32 0.5, %v59_v33  ;;  %v61_v40 = vadd.f32 1.0, %v457_v34  ;;  %478 = vtanh.f32 %v38_v51 }
  0x14   :  { %v461_v43 = vpop.eup %460  ;;  %104 = vrot.lane.b32.xlu0 %v536_v35, %s480_s5  ;;  %v547_v44 = vmul.f32 0.5, %v57_v36  ;;  %v60_v45 = vadd.f32 1.0, %v459_v38 }
  0x15   :  { %v463_v47 = vpop.eup %462  ;;  %v554_v49 = vmul.f32 0.5, %v61_v40  ;;  %v63_v50 = vadd.f32 1.0, %v461_v43 }
  0x16   :  { %v465_v52 = vpop.eup %464  ;;  %v558_v53 = vmul.f32 0.5, %v60_v45  ;;  %v62_v54 = vadd.f32 1.0, %v463_v47 }
  0x17   :  { %110 = vrot.lane.b32.xlu1 %v540_v39, %s480_s5  ;;  %v467_v55 = vpop.eup %466  ;;  %v562_v56 = vmul.f32 0.5, %v63_v50  ;;  %v65_v57 = vadd.f32 1.0, %v465_v52 }
  0x18   :  { %106 = vrot.lane.b32.xlu0 %v547_v44, %s480_s5  ;;  %v469_v58 = vpop.eup %468  ;;  %v566_v59 = vmul.f32 0.5, %v62_v54  ;;  %v64_v60 = vadd.f32 1.0, %v467_v55 }
  0x19   :  { %v471_v61 = vpop.eup %470  ;;  %v570_v62 = vmul.f32 0.5, %v65_v57  ;;  %v67_v63 = vadd.f32 1.0, %v469_v58 }
  0x1a   :  { %v473_v0 = vpop.eup %472  ;;  %v574_v1 = vmul.f32 0.5, %v64_v60  ;;  %v66_v2 = vadd.f32 1.0, %v471_v61 }
  0x1b   :  { %114 = vrot.lane.b32.xlu1 %v554_v49, %s480_s5  ;;  %v475_v3 = vpop.eup %474  ;;  %v578_v4 = vmul.f32 0.5, %v67_v63  ;;  %v69_v5 = vadd.f32 1.0, %v473_v0 }
  0x1c   :  { %112 = vrot.lane.b32.xlu0 %v558_v53, %s480_s5  ;;  %v477_v6 = vpop.eup %476  ;;  %v582_v7 = vmul.f32 0.5, %v66_v2  ;;  %v68_v8 = vadd.f32 1.0, %v475_v3 }
  0x1d   :  { %v479_v9 = vpop.eup %478  ;;  %v586_v10 = vmul.f32 0.5, %v69_v5  ;;  %v71_v11 = vadd.f32 1.0, %v477_v6 }
  0x1e   :  { %v590_v12 = vmul.f32 0.5, %v68_v8  ;;  %v70_v13 = vadd.f32 1.0, %v479_v9 }
  0x1f   :  { %118 = vrot.lane.b32.xlu1 %v562_v56, %s480_s5  ;;  %v594_v14 = vmul.f32 0.5, %v71_v11 }
  0x20   :  { %116 = vrot.lane.b32.xlu0 %v566_v59, %s480_s5  ;;  %v598_v15 = vmul.f32 0.5, %v70_v13 }
  0x23   :  { %122 = vrot.lane.b32.xlu1 %v570_v62, %s480_s5 }
  0x24   :  { %120 = vrot.lane.b32.xlu0 %v574_v1, %s480_s5 }
  0x27   :  { %126 = vrot.lane.b32.xlu1 %v578_v4, %s480_s5 }
  0x28   :  { %124 = vrot.lane.b32.xlu0 %v582_v7, %s480_s5 }
  0x2b   :  { %130 = vrot.lane.b32.xlu1 %v586_v10, %s480_s5 }
  0x2c   :  { %128 = vrot.lane.b32.xlu0 %v590_v12, %s480_s5 }
  0x2f   :  { %134 = vrot.lane.b32.xlu1 %v594_v14, %s480_s5 }
  0x30   :  { %132 = vrot.lane.b32.xlu0 %v598_v15, %s480_s5 }
  0x33   :  { %154 = vrot.lane.b32.xlu1 %v547_v44, %s481_s0 }
  0x34   :  { %152 = vrot.lane.b32.xlu0 %v536_v35, %s481_s0 }
  0x37   :  { %158 = vrot.lane.b32.xlu1 %v540_v39, %s481_s0 }
  0x38   :  { %156 = vrot.lane.b32.xlu0 %v534_v32, %s481_s0 }
  0x3b   :  { %162 = vrot.lane.b32.xlu1 %v554_v49, %s481_s0 }
  0x3c   :  { %160 = vrot.lane.b32.xlu0 %v558_v53, %s481_s0 }
  0x3f   :  { %166 = vrot.lane.b32.xlu1 %v562_v56, %s481_s0 }
  0x40   :  { %164 = vrot.lane.b32.xlu0 %v566_v59, %s481_s0 }
  0x43   :  { %170 = vrot.lane.b32.xlu1 %v570_v62, %s481_s0 }
  0x44   :  { %168 = vrot.lane.b32.xlu0 %v574_v1, %s481_s0 }
  0x47   :  { %174 = vrot.lane.b32.xlu1 %v578_v4, %s481_s0 }
  0x48   :  { %172 = vrot.lane.b32.xlu0 %v582_v7, %s481_s0 }
  0x4b   :  { %178 = vrot.lane.b32.xlu1 %v586_v10, %s481_s0 }
  0x4c   :  { %176 = vrot.lane.b32.xlu0 %v590_v12, %s481_s0 }
  0x4f   :  { %182 = vrot.lane.b32.xlu1 %v594_v14, %s481_s0 }
  0x50   :  { %180 = vrot.lane.b32.xlu0 %v598_v15, %s481_s0 }
  0x85   :  { %v109_v16 = vpop.permute.xlu1 %108 }
  0x86   :  { %v105_v17 = vpop.permute.xlu0 %104 }
  0x89   :  { %v111_v18 = vpop.permute.xlu1 %110 }
  0x8a   :  { %v107_v19 = vpop.permute.xlu0 %106 }
  0x8d   :  { %v115_v20 = vpop.permute.xlu1 %114 }
  0x8e   :  { %v113_v21 = vpop.permute.xlu0 %112 }
  0x91   :  { %v620_v22 = vpop.permute.xlu1 %118 }
  0x92   :  { %v622_v23 = vpop.permute.xlu0 %116 }
  0x95   :  { %v624_v24 = vpop.permute.xlu1 %122 }
  0x96   :  { %v626_v25 = vpop.permute.xlu0 %120 }
  0x99   :  { %v628_v26 = vpop.permute.xlu1 %126 }
  0x9a   :  { %v630_v27 = vpop.permute.xlu0 %124 }
  0x9d   :  { %v632_v28 = vpop.permute.xlu1 %130 }
  0x9e   :  { %v634_v29 = vpop.permute.xlu0 %128 }
  0xa1   :  { %v636_v30 = vpop.permute.xlu1 %134 }
  0xa2   :  { %v638_v31 = vpop.permute.xlu0 %132 }
  0xa5   :  { %v155_v33 = vpop.permute.xlu1 %154 }
  0xa6   :  { %v201_v34 = vmax.f32 %v107_v19, %v155_v33  ;;  %v153_v36 = vpop.permute.xlu0 %152 }
  0xa7   :  { %v200_v37 = vmax.f32 %v105_v17, %v153_v36 }
  0xa8   :  { %v217_v38 = vmax.f32 %v547_v44, %v201_v34 }
  0xa9   :  { %v216_v40 = vmax.f32 %v536_v35, %v200_v37  ;;  %v159_v41 = vpop.permute.xlu1 %158 }
  0xaa   :  { %v240_v42 = vrot.slane %v217_v38, 7  ;;  %v307_v43 = vrot.slane %v217_v38, 1  ;;  %v203_v45 = vmax.f32 %v111_v18, %v159_v41  ;;  %v157_v46 = vpop.permute.xlu0 %156 }
  0xab   :  { %v265_v47 = vrot.slane %v216_v40, 7  ;;  %v306_v48 = vrot.slane %v216_v40, 1  ;;  %v202_v50 = vmax.f32 %v109_v16, %v157_v46 }
  0xac   :  { %v219_v51 = vmax.f32 %v540_v39, %v203_v45 }
  0xad   :  { %v266_v52 = vsel %vm264_vm0, %v265_v47, %v240_v42  ;;  %v297_v54 = vsel %vm264_vm0, %v240_v42, %v265_v47  ;;  %v308_v55 = vsel %vm305_vm1, %v306_v48, %v307_v43  ;;  %v354_v57 = vsel %vm305_vm1, %v307_v43, %v306_v48  ;;  %v163_v58 = vpop.permute.xlu1 %162 }
  0xae   :  { %v362_v60 = vmax.f32 %v297_v54, %v308_v55  ;;  %v363_v61 = vmax.f32 %v266_v52, %v354_v57  ;;  %v161_v63 = vpop.permute.xlu0 %160  ;;  %v241_v0 = vrot.slane %v219_v51, 7  ;;  %v218_v2 = vmax.f32 %v534_v32, %v202_v50 }
  0xaf   :  { %v205_v3 = vmax.f32 %v115_v20, %v163_v58  ;;  %v204_v5 = vmax.f32 %v113_v21, %v161_v63  ;;  %v310_v9 = vrot.slane %v219_v51, 1 }
  0xb0   :  { %v378_v6 = vmax.f32 %v216_v40, %v362_v60  ;;  %v379_v8 = vmax.f32 %v217_v38, %v363_v61  ;;  %v267_v11 = vrot.slane %v218_v2, 7  ;;  %v309_v13 = vrot.slane %v218_v2, 1 }
  0xb1   :  { %v221_v16 = vmax.f32 %v554_v49, %v205_v3  ;;  %v220_v17 = vmax.f32 %v558_v53, %v204_v5  ;;  %v167_v18 = vpop.permute.xlu1 %166 }
  0xb2   :  { %vm394_vm2 = vcmp.ge.f32.partialorder %v536_v35, %v378_v6  ;;  %vm395_vm3 = vcmp.ge.f32.partialorder %v547_v44, %v379_v8  ;;  %v207_v19 = vmax.f32 %v620_v22, %v167_v18  ;;  %v165_v33 = vpop.permute.xlu0 %164  ;;  %v268_v34 = vsel %vm264_vm0, %v267_v11, %v241_v0 }
  0xb3   :  { %v410_v20 = vsel %vm394_vm2, %v536_v35, 0.0  ;;  %v411_v21 = vsel %vm395_vm3, %v547_v44, 0.0  ;;  %v298_v36 = vsel %vm264_vm0, %v241_v0, %v267_v11  ;;  %v311_v37 = vsel %vm305_vm1, %v309_v13, %v310_v9 }
  0xb4   :  { %426 = vst [vmem:[%s784_s1] sm:$0xff] %v410_v20  ;;  %427 = vst [vmem:[%s784_s1 + $0x8] sm:$0xff] %v411_v21  ;;  %v355_v22 = vsel %vm305_vm1, %v310_v9, %v309_v13  ;;  %v242_v38 = vrot.slane %v221_v16, 7  ;;  %v313_v35 = vrot.slane %v221_v16, 1  ;;  %v364_v40 = vmax.f32 %v298_v36, %v311_v37 }
  0xb5   :  { %v365_v44 = vmax.f32 %v268_v34, %v355_v22  ;;  %v269_v41 = vrot.slane %v220_v17, 7  ;;  %v312_v42 = vrot.slane %v220_v17, 1  ;;  %v171_v43 = vpop.permute.xlu1 %170  ;;  %v223_v45 = vmax.f32 %v562_v56, %v207_v19 }
  0xb6   :  { %v206_v46 = vmax.f32 %v622_v23, %v165_v33  ;;  %v209_v47 = vmax.f32 %v624_v24, %v171_v43  ;;  %v169_v48 = vpop.permute.xlu0 %168  ;;  %v380_v50 = vmax.f32 %v218_v2, %v364_v40 }
  0xb7   :  { %v381_v52 = vmax.f32 %v219_v51, %v365_v44  ;;  %v270_v54 = vsel %vm264_vm0, %v269_v41, %v242_v38  ;;  %v299_v55 = vsel %vm264_vm0, %v242_v38, %v269_v41  ;;  %v314_v57 = vsel %vm305_vm1, %v312_v42, %v313_v35 }
  0xb8   :  { %v356_v58 = vsel %vm305_vm1, %v313_v35, %v312_v42  ;;  %v243_v60 = vrot.slane %v223_v45, 7  ;;  %v316_v61 = vrot.slane %v223_v45, 1  ;;  %vm396_vm4 = vcmp.ge.f32.partialorder %v534_v32, %v380_v50 }
  0xb9   :  { %vm397_vm5 = vcmp.ge.f32.partialorder %v540_v39, %v381_v52  ;;  %v366_v23 = vmax.f32 %v299_v55, %v314_v57  ;;  %v367_v63 = vmax.f32 %v270_v54, %v356_v58  ;;  %v175_v24 = vpop.permute.xlu1 %174  ;;  %v412_v0 = vsel %vm396_vm4, %v534_v32, 0.0 }
  0xba   :  { %v413_v51 = vsel %vm397_vm5, %v540_v39, 0.0  ;;  %v222_v2 = vmax.f32 %v566_v59, %v206_v46  ;;  %v225_v3 = vmax.f32 %v570_v62, %v209_v47  ;;  %v173_v5 = vpop.permute.xlu0 %172  ;;  %428 = vst [vmem:[%s784_s1 + $0x10] sm:$0xff] %v412_v0  ;;  %v208_v9 = vmax.f32 %v626_v25, %v169_v48 }
  0xbb   :  { %429 = vst [vmem:[%s784_s1 + $0x18] sm:$0xff] %v413_v51  ;;  %v382_v6 = vmax.f32 %v220_v17, %v366_v23  ;;  %v383_v8 = vmax.f32 %v221_v16, %v367_v63  ;;  %v211_v32 = vmax.f32 %v628_v26, %v175_v24  ;;  %v210_v52 = vmax.f32 %v630_v27, %v173_v5 }
  0xbc   :  { %v271_v39 = vrot.slane %v222_v2, 7  ;;  %v315_v11 = vrot.slane %v222_v2, 1  ;;  %v244_v13 = vrot.slane %v225_v3, 7  ;;  %v319_v18 = vrot.slane %v225_v3, 1 }
  0xbd   :  { %vm398_vm6 = vcmp.ge.f32.partialorder %v558_v53, %v382_v6  ;;  %vm399_vm7 = vcmp.ge.f32.partialorder %v554_v49, %v383_v8  ;;  %v224_v19 = vmax.f32 %v574_v1, %v208_v9  ;;  %v690_v33 = vmax.f32 %v578_v4, %v211_v32  ;;  %v179_v20 = vpop.permute.xlu1 %178 }
  0xbe   :  { %v414_v16 = vsel %vm398_vm6, %v558_v53, 0.0  ;;  %v415_v25 = vsel %vm399_vm7, %v554_v49, 0.0  ;;  %v272_v26 = vsel %vm264_vm0, %v271_v39, %v243_v60  ;;  %v300_v17 = vsel %vm264_vm0, %v243_v60, %v271_v39  ;;  %v177_v35 = vpop.permute.xlu0 %176 }
  0xbf   :  { %430 = vst [vmem:[%s784_s1 + $0x20] sm:$0xff] %v414_v16  ;;  %431 = vst [vmem:[%s784_s1 + $0x28] sm:$0xff] %v415_v25  ;;  %v317_v21 = vsel %vm305_vm1, %v315_v11, %v316_v61  ;;  %v357_v34 = vsel %vm305_vm1, %v316_v61, %v315_v11  ;;  %v273_v36 = vrot.slane %v224_v19, 7  ;;  %v318_v53 = vrot.slane %v224_v19, 1 }
  0xc0   :  { %v368_v37 = vmax.f32 %v300_v17, %v317_v21  ;;  %v369_v49 = vmax.f32 %v272_v26, %v357_v34  ;;  %v245_v22 = vrot.slane %v690_v33, 7  ;;  %v322_v38 = vrot.slane %v690_v33, 1 }
  0xc1   :  { %v274_v40 = vsel %vm264_vm0, %v273_v36, %v244_v13  ;;  %v301_v44 = vsel %vm264_vm0, %v244_v13, %v273_v36  ;;  %v320_v41 = vsel %vm305_vm1, %v318_v53, %v319_v18  ;;  %v358_v42 = vsel %vm305_vm1, %v319_v18, %v318_v53  ;;  %v183_v43 = vpop.permute.xlu1 %182 }
  0xc2   :  { %v384_v46 = vmax.f32 %v222_v2, %v368_v37  ;;  %v385_v47 = vmax.f32 %v223_v45, %v369_v49  ;;  %v370_v48 = vmax.f32 %v301_v44, %v320_v41  ;;  %v371_v50 = vmax.f32 %v274_v40, %v358_v42  ;;  %v181_v39 = vpop.permute.xlu0 %180 }
  0xc3   :  { %v213_v54 = vmax.f32 %v632_v28, %v179_v20  ;;  %v212_v55 = vmax.f32 %v634_v29, %v177_v35  ;;  %v215_v57 = vmax.f32 %v636_v30, %v183_v43  ;;  %v226_v23 = vmax.f32 %v582_v7, %v210_v52 }
  0xc4   :  { %vm400_vm8 = vcmp.ge.f32.partialorder %v566_v59, %v384_v46  ;;  %vm401_vm9 = vcmp.ge.f32.partialorder %v562_v56, %v385_v47  ;;  %v386_v58 = vmax.f32 %v224_v19, %v370_v48  ;;  %v387_v60 = vmax.f32 %v225_v3, %v371_v50 }
  0xc5   :  { %v416_v61 = vsel %vm400_vm8, %v566_v59, 0.0  ;;  %v417_v45 = vsel %vm401_vm9, %v562_v56, 0.0  ;;  %v229_v27 = vmax.f32 %v586_v10, %v213_v54  ;;  %v228_v59 = vmax.f32 %v590_v12, %v212_v55 }
  0xc6   :  { %432 = vst [vmem:[%s784_s1 + $0x30] sm:$0xff] %v416_v61  ;;  %433 = vst [vmem:[%s784_s1 + $0x38] sm:$0xff] %v417_v45  ;;  %vm402_vm10 = vcmp.ge.f32.partialorder %v574_v1, %v386_v58  ;;  %vm403_vm11 = vcmp.ge.f32.partialorder %v570_v62, %v387_v60  ;;  %v231_v56 = vmax.f32 %v594_v14, %v215_v57  ;;  %v275_v30 = vrot.slane %v226_v23, 7 }
  0xc7   :  { %v418_v28 = vsel %vm402_vm10, %v574_v1, 0.0  ;;  %v419_v29 = vsel %vm403_vm11, %v570_v62, 0.0  ;;  %v321_v63 = vrot.slane %v226_v23, 1  ;;  %v246_v24 = vrot.slane %v229_v27, 7 }
  0xc8   :  { %434 = vst [vmem:[%s784_s1 + $0x40] sm:$0xff] %v418_v28  ;;  %435 = vst [vmem:[%s784_s1 + $0x48] sm:$0xff] %v419_v29  ;;  %v325_v0 = vrot.slane %v229_v27, 1  ;;  %v277_v51 = vrot.slane %v228_v59, 7  ;;  %v324_v2 = vrot.slane %v228_v59, 1  ;;  %v276_v3 = vsel %vm264_vm0, %v275_v30, %v245_v22 }
  0xc9   :  { %v302_v1 = vsel %vm264_vm0, %v245_v22, %v275_v30  ;;  %v323_v62 = vsel %vm305_vm1, %v321_v63, %v322_v38  ;;  %v359_v5 = vsel %vm305_vm1, %v322_v38, %v321_v63  ;;  %v247_v25 = vrot.slane %v231_v56, 7 }
  0xca   :  { %v372_v6 = vmax.f32 %v302_v1, %v323_v62  ;;  %v373_v8 = vmax.f32 %v276_v3, %v359_v5  ;;  %v278_v9 = vsel %vm264_vm0, %v277_v51, %v246_v24  ;;  %v303_v32 = vsel %vm264_vm0, %v246_v24, %v277_v51 }
  0xcb   :  { %v326_v11 = vsel %vm305_vm1, %v324_v2, %v325_v0  ;;  %v360_v13 = vsel %vm305_vm1, %v325_v0, %v324_v2  ;;  %v214_v26 = vmax.f32 %v638_v31, %v181_v39  ;;  %v328_v53 = vrot.slane %v231_v56, 1 }
  0xcc   :  { %v388_v18 = vmax.f32 %v226_v23, %v372_v6  ;;  %v389_v19 = vmax.f32 %v690_v33, %v373_v8  ;;  %v374_v20 = vmax.f32 %v303_v32, %v326_v11  ;;  %v375_v16 = vmax.f32 %v278_v9, %v360_v13 }
  0xcd   :  { %v230_v37 = vmax.f32 %v598_v15, %v214_v26 }
  0xce   :  { %vm404_vm12 = vcmp.ge.f32.partialorder %v582_v7, %v388_v18  ;;  %vm405_vm13 = vcmp.ge.f32.partialorder %v578_v4, %v389_v19  ;;  %v390_v17 = vmax.f32 %v228_v59, %v374_v20  ;;  %v391_v21 = vmax.f32 %v229_v27, %v375_v16 }
  0xcf   :  { %v420_v34 = vsel %vm404_vm12, %v582_v7, 0.0  ;;  %v421_v36 = vsel %vm405_vm13, %v578_v4, 0.0  ;;  %v279_v4 = vrot.slane %v230_v37, 7  ;;  %v327_v33 = vrot.slane %v230_v37, 1 }
  0xd0   :  { %436 = vst [vmem:[%s784_s1 + $0x50] sm:$0xff] %v420_v34  ;;  %437 = vst [vmem:[%s784_s1 + $0x58] sm:$0xff] %v421_v36  ;;  %vm406_vm14 = vcmp.ge.f32.partialorder %v590_v12, %v390_v17  ;;  %vm407_vm15 = vcmp.ge.f32.partialorder %v586_v10, %v391_v21 }
  0xd1   :  { %v422_v31 = vsel %vm406_vm14, %v590_v12, 0.0  ;;  %v423_v7 = vsel %vm407_vm15, %v586_v10, 0.0  ;;  %v280_v49 = vsel %vm264_vm0, %v279_v4, %v247_v25  ;;  %v304_v22 = vsel %vm264_vm0, %v247_v25, %v279_v4 }
  0xd2   :  { %438 = vst [vmem:[%s784_s1 + $0x60] sm:$0xff] %v422_v31  ;;  %439 = vst [vmem:[%s784_s1 + $0x68] sm:$0xff] %v423_v7  ;;  %v329_v38 = vsel %vm305_vm1, %v327_v33, %v328_v53  ;;  %v361_v12 = vsel %vm305_vm1, %v328_v53, %v327_v33 }
  0xd3   :  { %v376_v35 = vmax.f32 %v304_v22, %v329_v38  ;;  %v377_v10 = vmax.f32 %v280_v49, %v361_v12 }
  0xd5   :  { %v392_v40 = vmax.f32 %v230_v37, %v376_v35  ;;  %v393_v44 = vmax.f32 %v231_v56, %v377_v10 }
  0xd7   :  { %vm408_vm2 = vcmp.ge.f32.partialorder %v598_v15, %v392_v40  ;;  %vm409_vm3 = vcmp.ge.f32.partialorder %v594_v14, %v393_v44 }
  0xd8   :  { %v424_v41 = vsel %vm408_vm2, %v598_v15, 0.0  ;;  %v425_v42 = vsel %vm409_vm3, %v594_v14, 0.0 }
  0xd9   :  { %440 = vst [vmem:[%s784_s1 + $0x70] sm:$0xff] %v424_v41  ;;  %441 = vst [vmem:[%s784_s1 + $0x78] sm:$0xff] %v425_v42 }

// kernel: network_forward.10
= control target key start
LH: loop header
LB: loop body
LE: loop exit
PB: predicated region body
PF: predicated region fallthrough
CT: control target
= control target key end

     0   :  { %vm152_vm0 = vcmask 146432   ;;  %vm201_vm1 = vcmask 1040384   ;;  %vm437_vm2 = vcmask 261120   ;;  %s1286_s1 = inlined_call_operand.vmem [shape: bf16[18,32], index: 1, kind: input, shape index: {}]   ;;  %s1287_s0 = inlined_call_operand.vmem [shape: bf16[256,18], index: 0, kind: input, shape index: {}]   ;;  %s1288_s3 = inlined_call_operand.vmem [shape: bf16[32,128], index: 3, kind: input, shape index: {}]   ;;  %s1289_s2 = inlined_call_operand.vmem [shape: f32[1,32], index: 2, kind: input, shape index: {}]   ;;  %s1290_s4 = inlined_call_operand.vmem [shape: f32[1,128], index: 4, kind: input, shape index: {}]   ;;  %s1291_s5 = inlined_call_operand.vmem [shape: f32[256,128], index: 5, kind: output, shape index: {}]  }
   0x1   :  { %v910_v0 = vld [vmem:[%s1286_s1] sm:$0xff]   ;;  %v911_v1 = vld [vmem:[%s1286_s1 + $0x8] ss:$0 sps:$4 sm:$0x11]   ;;  %v914_v5 = vld [vmem:[%s1287_s0 + $0x10] sm:$0xff]  }
   0x2   :  { %v912_v2 = vld [vmem:[%s1287_s0] sm:$0xff]   ;;  %837 = vmatprep.subr.bf16.mxu0 %v910_v0  ;;  %v203_v3 = vsel %vm201_vm1, %v911_v1, 0  ;;  %v913_v4 = vld [vmem:[%s1287_s0 + $0x8] sm:$0xff]   ;;  %v915_v6 = vld [vmem:[%s1287_s0 + $0x18] sm:$0xff]  }
   0x3   :  { %838 = vmatpush3.bf16.msra.mxu0 %v910_v0  ;;  %841 = vmatprep.mubr.msk.bf16.mxu0 %vm152_vm0, %v912_v2  ;;  %v916_v7 = vld [vmem:[%s1287_s0 + $0x20] sm:$0xff]   ;;  %v917_v8 = vld [vmem:[%s1287_s0 + $0x28] sm:$0xff]   ;;  %v918_v9 = vld [vmem:[%s1287_s0 + $0x30] sm:$0xff]  }
   0x4   :  { %909 = vmatprep.subr.msk.bf16.mxu0 %vm201_vm1, %v911_v1  ;;  %v919_v10 = vld [vmem:[%s1287_s0 + $0x38] sm:$0xff]   ;;  %v920_v11 = vld [vmem:[%s1287_s0 + $0x40] sm:$0xff]   ;;  %v921_v12 = vld [vmem:[%s1287_s0 + $0x48] sm:$0xff]  }
   0x5   :  { %v922_v13 = vld [vmem:[%s1287_s0 + $0x50] sm:$0xff]   ;;  %v923_v14 = vld [vmem:[%s1287_s0 + $0x58] sm:$0xff]   ;;  %v924_v15 = vld [vmem:[%s1287_s0 + $0x60] sm:$0xff]  }
   0x6   :  { %v925_v16 = vld [vmem:[%s1287_s0 + $0x68] sm:$0xff]   ;;  %v926_v17 = vld [vmem:[%s1287_s0 + $0x70] sm:$0xff]   ;;  %v927_v18 = vld [vmem:[%s1287_s0 + $0x78] sm:$0xff]  }
   0x7   :  { %840 = vmatpush3.bf16.msra.mxu0 %v203_v3  ;;  %v928_v19 = vld [vmem:[%s1288_s3] sm:$0xff]   ;;  %v929_v20 = vld [vmem:[%s1288_s3 + $0x8] sm:$0xff]  }
   0x8   :  { %873 = vmatprep.subr.bf16.mxu1 %v928_v19  ;;  %v1103_v21 = vld [vmem:[%s1289_s2] ss:$0 sm:$0xff] }
   0x9   :  { %874 = vmatpush3.bf16.msra.mxu1 %v928_v19 }
   0xa   :  { %842 = vmatmul.mubr.msk.bf16.vlgmr.msra.gmra.mrb[0].mxu0 %vm152_vm0, %v913_v4  ;;  %875 = vmatprep.subr.bf16.mxu1 %v929_v20 }
   0xb   :  { %845 = vmatprep.mubr.msk.bf16.mxu0 %vm152_vm0, %v914_v5 }
   0xd   :  { %876 = vmatpush3.bf16.msra.mxu1 %v929_v20 }
  0x12   :  { %846 = vmatmul.mubr.msk.bf16.gmra.mrb[4].mxu0 %vm152_vm0, %v915_v6 }
  0x13   :  { %849 = vmatprep.mubr.msk.bf16.mxu0 %vm152_vm0, %v916_v7 }
  0x1a   :  { %850 = vmatmul.mubr.msk.bf16.gmra.mrb[8].mxu0 %vm152_vm0, %v917_v8 }
  0x1b   :  { %853 = vmatprep.mubr.msk.bf16.mxu0 %vm152_vm0, %v918_v9 }
  0x22   :  { %854 = vmatmul.mubr.msk.bf16.gmra.mrb[12].mxu0 %vm152_vm0, %v919_v10 }
  0x23   :  { %857 = vmatprep.mubr.msk.bf16.mxu0 %vm152_vm0, %v920_v11 }
  0x2a   :  { %858 = vmatmul.mubr.msk.bf16.gmra.mrb[16].mxu0 %vm152_vm0, %v921_v12 }
  0x2b   :  { %861 = vmatprep.mubr.msk.bf16.mxu0 %vm152_vm0, %v922_v13 }
  0x32   :  { %862 = vmatmul.mubr.msk.bf16.gmra.mrb[20].mxu0 %vm152_vm0, %v923_v14 }
  0x33   :  { %865 = vmatprep.mubr.msk.bf16.mxu0 %vm152_vm0, %v924_v15 }
  0x3a   :  { %866 = vmatmul.mubr.msk.bf16.gmra.mrb[24].mxu0 %vm152_vm0, %v925_v16 }
  0x3b   :  { %869 = vmatprep.mubr.msk.bf16.mxu0 %vm152_vm0, %v926_v17 }
  0x42   :  { %870 = vmatmul.mubr.msk.bf16.gmra.mrb[28].mxu0 %vm152_vm0, %v927_v18 }
  0xdd   :  { %v843_v22 = vpop.f32.mrb[0].mxu0 }
  0xde   :  { %v248_v23 = vadd.f32 %v843_v22, %v1103_v21  ;;  %v239_v24 = vpop.f32.mrb[1].mxu0 }
  0xdf   :  { %v240_v25 = vadd.f32 %v1103_v21, %v239_v24  ;;  %v844_v26 = vpop.f32.mrb[2].mxu0 }
  0xe0   :  { %v251_v27 = vadd.f32 %v844_v26, %v1103_v21  ;;  %v242_v28 = vpop.f32.mrb[3].mxu0  ;;  %v368_v30 = vmax.f32 %v248_v23, 0.0 }
  0xe1   :  { %v243_v29 = vadd.f32 %v1103_v21, %v242_v28  ;;  %v366_v32 = vmax.f32 %v240_v25, 0.0 }
  0xe2   :  { %v369_v31 = vmax.f32 %v251_v27, 0.0 }
  0xe3   :  { %v367_v33 = vmax.f32 %v243_v29, 0.0 }
  0xe4   :  { %v399_v34 = vpack.c.bf16 %v369_v31, %v368_v30 }
  0xe5   :  { %v847_v35 = vpop.f32.mrb[4].mxu0  ;;  %v398_v36 = vpack.c.bf16 %v367_v33, %v366_v32 }
  0xe6   :  { %v264_v37 = vadd.f32 %v847_v35, %v1103_v21  ;;  %v255_v38 = vpop.f32.mrb[5].mxu0 }
  0xe7   :  { %v256_v39 = vadd.f32 %v1103_v21, %v255_v38  ;;  %v848_v40 = vpop.f32.mrb[6].mxu0  ;;  %877 = vmatprep.mubr.msk.bf16.mxu1 %vm437_vm2, %v398_v36 }
  0xe8   :  { %v267_v41 = vadd.f32 %v848_v40, %v1103_v21  ;;  %v258_v42 = vpop.f32.mrb[7].mxu0  ;;  %878 = vmatmul.mubr.msk.bf16.vlgmr.msra.gmra.mrb[0].mxu1 %vm437_vm2, %v399_v34  ;;  %v372_v44 = vmax.f32 %v264_v37, 0.0 }
  0xe9   :  { %v259_v43 = vadd.f32 %v1103_v21, %v258_v42  ;;  %v370_v46 = vmax.f32 %v256_v39, 0.0 }
  0xea   :  { %v373_v45 = vmax.f32 %v267_v41, 0.0 }
  0xeb   :  { %v371_v47 = vmax.f32 %v259_v43, 0.0 }
  0xec   :  { %v401_v48 = vpack.c.bf16 %v373_v45, %v372_v44 }
  0xed   :  { %v400_v49 = vpack.c.bf16 %v371_v47, %v370_v46  ;;  %v851_v50 = vpop.f32.mrb[8].mxu0 }
  0xee   :  { %v280_v51 = vadd.f32 %v851_v50, %v1103_v21  ;;  %v271_v52 = vpop.f32.mrb[9].mxu0 }
  0xef   :  { %v272_v53 = vadd.f32 %v1103_v21, %v271_v52  ;;  %v852_v54 = vpop.f32.mrb[10].mxu0  ;;  %881 = vmatprep.mubr.msk.bf16.mxu1 %vm437_vm2, %v400_v49 }
  0xf0   :  { %v283_v55 = vadd.f32 %v852_v54, %v1103_v21  ;;  %v274_v56 = vpop.f32.mrb[11].mxu0  ;;  %882 = vmatmul.mubr.msk.bf16.gmra.mrb[4].mxu1 %vm437_vm2, %v401_v48  ;;  %v376_v58 = vmax.f32 %v280_v51, 0.0 }
  0xf1   :  { %v275_v57 = vadd.f32 %v1103_v21, %v274_v56  ;;  %v374_v60 = vmax.f32 %v272_v53, 0.0 }
  0xf2   :  { %v377_v59 = vmax.f32 %v283_v55, 0.0 }
  0xf3   :  { %v375_v61 = vmax.f32 %v275_v57, 0.0 }
  0xf4   :  { %v403_v62 = vpack.c.bf16 %v377_v59, %v376_v58 }
  0xf5   :  { %v402_v63 = vpack.c.bf16 %v375_v61, %v374_v60  ;;  %v855_v0 = vpop.f32.mrb[12].mxu0 }
  0xf6   :  { %v296_v1 = vadd.f32 %v855_v0, %v1103_v21  ;;  %v287_v2 = vpop.f32.mrb[13].mxu0 }
  0xf7   :  { %v288_v3 = vadd.f32 %v1103_v21, %v287_v2  ;;  %v856_v4 = vpop.f32.mrb[14].mxu0  ;;  %885 = vmatprep.mubr.msk.bf16.mxu1 %vm437_vm2, %v402_v63 }
  0xf8   :  { %v299_v5 = vadd.f32 %v856_v4, %v1103_v21  ;;  %v290_v6 = vpop.f32.mrb[15].mxu0  ;;  %886 = vmatmul.mubr.msk.bf16.gmra.mrb[8].mxu1 %vm437_vm2, %v403_v62  ;;  %v380_v8 = vmax.f32 %v296_v1, 0.0 }
  0xf9   :  { %v291_v7 = vadd.f32 %v1103_v21, %v290_v6  ;;  %v378_v10 = vmax.f32 %v288_v3, 0.0 }
  0xfa   :  { %v381_v9 = vmax.f32 %v299_v5, 0.0 }
  0xfb   :  { %v379_v11 = vmax.f32 %v291_v7, 0.0  ;;  %v1156_v7 = vld [vmem:[%s1290_s4] ss:$0 sm:$0xff] }
  0xfc   :  { %v405_v12 = vpack.c.bf16 %v381_v9, %v380_v8 }
  0xfd   :  { %v404_v13 = vpack.c.bf16 %v379_v11, %v378_v10  ;;  %v859_v14 = vpop.f32.mrb[16].mxu0 }
  0xfe   :  { %v312_v15 = vadd.f32 %v859_v14, %v1103_v21  ;;  %v303_v16 = vpop.f32.mrb[17].mxu0 }
  0xff   :  { %v304_v17 = vadd.f32 %v1103_v21, %v303_v16  ;;  %v860_v18 = vpop.f32.mrb[18].mxu0  ;;  %889 = vmatprep.mubr.msk.bf16.mxu1 %vm437_vm2, %v404_v13 }
 0x100   :  { %v315_v19 = vadd.f32 %v860_v18, %v1103_v21  ;;  %v306_v20 = vpop.f32.mrb[19].mxu0  ;;  %890 = vmatmul.mubr.msk.bf16.gmra.mrb[12].mxu1 %vm437_vm2, %v405_v12  ;;  %v384_v23 = vmax.f32 %v312_v15, 0.0 }
 0x101   :  { %v307_v22 = vadd.f32 %v1103_v21, %v306_v20  ;;  %v382_v25 = vmax.f32 %v304_v17, 0.0 }
 0x102   :  { %v385_v24 = vmax.f32 %v315_v19, 0.0 }
 0x103   :  { %v383_v26 = vmax.f32 %v307_v22, 0.0 }
 0x104   :  { %v407_v27 = vpack.c.bf16 %v385_v24, %v384_v23 }
 0x105   :  { %v406_v28 = vpack.c.bf16 %v383_v26, %v382_v25  ;;  %v863_v29 = vpop.f32.mrb[20].mxu0 }
 0x106   :  { %v328_v30 = vadd.f32 %v863_v29, %v1103_v21  ;;  %v319_v31 = vpop.f32.mrb[21].mxu0 }
 0x107   :  { %v320_v32 = vadd.f32 %v1103_v21, %v319_v31  ;;  %v864_v33 = vpop.f32.mrb[22].mxu0  ;;  %893 = vmatprep.mubr.msk.bf16.mxu1 %vm437_vm2, %v406_v28 }
 0x108   :  { %v331_v34 = vadd.f32 %v864_v33, %v1103_v21  ;;  %v322_v35 = vpop.f32.mrb[23].mxu0  ;;  %894 = vmatmul.mubr.msk.bf16.gmra.mrb[16].mxu1 %vm437_vm2, %v407_v27  ;;  %v388_v37 = vmax.f32 %v328_v30, 0.0 }
 0x109   :  { %v323_v36 = vadd.f32 %v1103_v21, %v322_v35  ;;  %v386_v39 = vmax.f32 %v320_v32, 0.0 }
 0x10a   :  { %v389_v38 = vmax.f32 %v331_v34, 0.0 }
 0x10b   :  { %v387_v40 = vmax.f32 %v323_v36, 0.0 }
 0x10c   :  { %v409_v41 = vpack.c.bf16 %v389_v38, %v388_v37 }
 0x10d   :  { %v408_v42 = vpack.c.bf16 %v387_v40, %v386_v39  ;;  %v867_v43 = vpop.f32.mrb[24].mxu0 }
 0x10e   :  { %v344_v44 = vadd.f32 %v867_v43, %v1103_v21  ;;  %v335_v45 = vpop.f32.mrb[25].mxu0 }
 0x10f   :  { %v336_v46 = vadd.f32 %v1103_v21, %v335_v45  ;;  %v868_v47 = vpop.f32.mrb[26].mxu0  ;;  %897 = vmatprep.mubr.msk.bf16.mxu1 %vm437_vm2, %v408_v42 }
 0x110   :  { %v347_v48 = vadd.f32 %v868_v47, %v1103_v21  ;;  %v338_v49 = vpop.f32.mrb[27].mxu0  ;;  %898 = vmatmul.mubr.msk.bf16.gmra.mrb[20].mxu1 %vm437_vm2, %v409_v41  ;;  %v392_v51 = vmax.f32 %v344_v44, 0.0 }
 0x111   :  { %v339_v50 = vadd.f32 %v1103_v21, %v338_v49  ;;  %v390_v53 = vmax.f32 %v336_v46, 0.0 }
 0x112   :  { %v393_v52 = vmax.f32 %v347_v48, 0.0 }
 0x113   :  { %v391_v54 = vmax.f32 %v339_v50, 0.0 }
 0x114   :  { %v411_v55 = vpack.c.bf16 %v393_v52, %v392_v51 }
 0x115   :  { %v410_v56 = vpack.c.bf16 %v391_v54, %v390_v53  ;;  %v871_v57 = vpop.f32.mrb[28].mxu0 }
 0x116   :  { %v360_v58 = vadd.f32 %v871_v57, %v1103_v21  ;;  %v351_v59 = vpop.f32.mrb[29].mxu0 }
 0x117   :  { %v352_v60 = vadd.f32 %v1103_v21, %v351_v59  ;;  %v872_v61 = vpop.f32.mrb[30].mxu0  ;;  %901 = vmatprep.mubr.msk.bf16.mxu1 %vm437_vm2, %v410_v56 }
 0x118   :  { %v363_v62 = vadd.f32 %v872_v61, %v1103_v21  ;;  %v354_v63 = vpop.f32.mrb[31].mxu0  ;;  %902 = vmatmul.mubr.msk.bf16.gmra.mrb[24].mxu1 %vm437_vm2, %v411_v55  ;;  %v396_v1 = vmax.f32 %v360_v58, 0.0 }
 0x119   :  { %v355_v0 = vadd.f32 %v1103_v21, %v354_v63  ;;  %v394_v3 = vmax.f32 %v352_v60, 0.0 }
 0x11a   :  { %v397_v2 = vmax.f32 %v363_v62, 0.0 }
 0x11b   :  { %v395_v4 = vmax.f32 %v355_v0, 0.0 }
 0x11c   :  { %v413_v5 = vpack.c.bf16 %v397_v2, %v396_v1 }
 0x11d   :  { %v412_v6 = vpack.c.bf16 %v395_v4, %v394_v3 }
 0x11f   :  { %905 = vmatprep.mubr.msk.bf16.mxu1 %vm437_vm2, %v412_v6 }
 0x120   :  { %906 = vmatmul.mubr.msk.bf16.gmra.mrb[28].mxu1 %vm437_vm2, %v413_v5 }
 0x1bb   :  { %v879_v8 = vpop.f32.mrb[0].mxu1 }
 0x1bc   :  { %v529_v9 = vadd.f32 %v879_v8, %v1156_v7  ;;  %v520_v10 = vpop.f32.mrb[1].mxu1 }
 0x1bd   :  { %v521_v21 = vadd.f32 %v1156_v7, %v520_v10  ;;  %v880_v11 = vpop.f32.mrb[2].mxu1 }
 0x1be   :  { %930 = vtanh.f32 %v529_v9  ;;  %v532_v12 = vadd.f32 %v880_v11, %v1156_v7  ;;  %v523_v13 = vpop.f32.mrb[3].mxu1 }
 0x1bf   :  { %932 = vtanh.f32 %v521_v21  ;;  %v524_v14 = vadd.f32 %v1156_v7, %v523_v13 }
 0x1c0   :  { %934 = vtanh.f32 %v532_v12 }
 0x1c1   :  { %936 = vtanh.f32 %v524_v14 }
 0x1c3   :  { %v883_v15 = vpop.f32.mrb[4].mxu1 }
 0x1c4   :  { %v545_v16 = vadd.f32 %v883_v15, %v1156_v7  ;;  %v536_v17 = vpop.f32.mrb[5].mxu1 }
 0x1c5   :  { %v537_v18 = vadd.f32 %v1156_v7, %v536_v17  ;;  %v884_v19 = vpop.f32.mrb[6].mxu1 }
 0x1c6   :  { %938 = vtanh.f32 %v545_v16  ;;  %v548_v20 = vadd.f32 %v884_v19, %v1156_v7  ;;  %v539_v22 = vpop.f32.mrb[7].mxu1 }
 0x1c7   :  { %940 = vtanh.f32 %v537_v18  ;;  %v540_v23 = vadd.f32 %v1156_v7, %v539_v22 }
 0x1c8   :  { %v931_v24 = vpop.eup %930  ;;  %942 = vtanh.f32 %v548_v20 }
 0x1c9   :  { %v933_v25 = vpop.eup %932  ;;  %v681_v26 = vmul.f32 4.0, %v931_v24  ;;  %944 = vtanh.f32 %v540_v23 }
 0x1ca   :  { %v935_v27 = vpop.eup %934  ;;  %v679_v28 = vmul.f32 4.0, %v933_v25 }
 0x1cb   :  { %v937_v29 = vpop.eup %936  ;;  %713 = vst [vmem:[%s1291_s5 + $0x10] sm:$0xff] %v681_v26  ;;  %v682_v30 = vmul.f32 4.0, %v935_v27  ;;  %v887_v31 = vpop.f32.mrb[8].mxu1 }
 0x1cc   :  { %711 = vst [vmem:[%s1291_s5] sm:$0xff] %v679_v28  ;;  %v680_v32 = vmul.f32 4.0, %v937_v29  ;;  %v561_v33 = vadd.f32 %v887_v31, %v1156_v7  ;;  %v552_v34 = vpop.f32.mrb[9].mxu1 }
 0x1cd   :  { %714 = vst [vmem:[%s1291_s5 + $0x18] sm:$0xff] %v682_v30  ;;  %v553_v35 = vadd.f32 %v1156_v7, %v552_v34  ;;  %v888_v36 = vpop.f32.mrb[10].mxu1 }
 0x1ce   :  { %712 = vst [vmem:[%s1291_s5 + $0x8] sm:$0xff] %v680_v32  ;;  %946 = vtanh.f32 %v561_v33  ;;  %v564_v37 = vadd.f32 %v888_v36, %v1156_v7  ;;  %v555_v38 = vpop.f32.mrb[11].mxu1 }
 0x1cf   :  { %948 = vtanh.f32 %v553_v35  ;;  %v556_v39 = vadd.f32 %v1156_v7, %v555_v38 }
 0x1d0   :  { %v939_v40 = vpop.eup %938  ;;  %950 = vtanh.f32 %v564_v37 }
 0x1d1   :  { %v941_v41 = vpop.eup %940  ;;  %v685_v42 = vmul.f32 4.0, %v939_v40  ;;  %952 = vtanh.f32 %v556_v39 }
 0x1d2   :  { %v943_v43 = vpop.eup %942  ;;  %v683_v44 = vmul.f32 4.0, %v941_v41 }
 0x1d3   :  { %v945_v45 = vpop.eup %944  ;;  %717 = vst [vmem:[%s1291_s5 + $0x30] sm:$0xff] %v685_v42  ;;  %v686_v46 = vmul.f32 4.0, %v943_v43  ;;  %v891_v47 = vpop.f32.mrb[12].mxu1 }
 0x1d4   :  { %715 = vst [vmem:[%s1291_s5 + $0x20] sm:$0xff] %v683_v44  ;;  %v684_v48 = vmul.f32 4.0, %v945_v45  ;;  %v577_v49 = vadd.f32 %v891_v47, %v1156_v7  ;;  %v568_v50 = vpop.f32.mrb[13].mxu1 }
 0x1d5   :  { %718 = vst [vmem:[%s1291_s5 + $0x38] sm:$0xff] %v686_v46  ;;  %v569_v51 = vadd.f32 %v1156_v7, %v568_v50  ;;  %v892_v52 = vpop.f32.mrb[14].mxu1 }
 0x1d6   :  { %716 = vst [vmem:[%s1291_s5 + $0x28] sm:$0xff] %v684_v48  ;;  %954 = vtanh.f32 %v577_v49  ;;  %v580_v53 = vadd.f32 %v892_v52, %v1156_v7  ;;  %v571_v54 = vpop.f32.mrb[15].mxu1 }
 0x1d7   :  { %956 = vtanh.f32 %v569_v51  ;;  %v572_v55 = vadd.f32 %v1156_v7, %v571_v54 }
 0x1d8   :  { %v947_v56 = vpop.eup %946  ;;  %958 = vtanh.f32 %v580_v53 }
 0x1d9   :  { %v949_v57 = vpop.eup %948  ;;  %v689_v58 = vmul.f32 4.0, %v947_v56  ;;  %960 = vtanh.f32 %v572_v55 }
 0x1da   :  { %v951_v59 = vpop.eup %950  ;;  %v687_v60 = vmul.f32 4.0, %v949_v57 }
 0x1db   :  { %v953_v61 = vpop.eup %952  ;;  %721 = vst [vmem:[%s1291_s5 + $0x50] sm:$0xff] %v689_v58  ;;  %v690_v62 = vmul.f32 4.0, %v951_v59  ;;  %v895_v63 = vpop.f32.mrb[16].mxu1 }
 0x1dc   :  { %719 = vst [vmem:[%s1291_s5 + $0x40] sm:$0xff] %v687_v60  ;;  %v688_v0 = vmul.f32 4.0, %v953_v61  ;;  %v593_v1 = vadd.f32 %v895_v63, %v1156_v7  ;;  %v584_v2 = vpop.f32.mrb[17].mxu1 }
 0x1dd   :  { %722 = vst [vmem:[%s1291_s5 + $0x58] sm:$0xff] %v690_v62  ;;  %v585_v3 = vadd.f32 %v1156_v7, %v584_v2  ;;  %v896_v4 = vpop.f32.mrb[18].mxu1 }
 0x1de   :  { %720 = vst [vmem:[%s1291_s5 + $0x48] sm:$0xff] %v688_v0  ;;  %962 = vtanh.f32 %v593_v1  ;;  %v596_v5 = vadd.f32 %v896_v4, %v1156_v7  ;;  %v587_v6 = vpop.f32.mrb[19].mxu1 }
 0x1df   :  { %964 = vtanh.f32 %v585_v3  ;;  %v588_v8 = vadd.f32 %v1156_v7, %v587_v6 }
 0x1e0   :  { %v955_v9 = vpop.eup %954  ;;  %966 = vtanh.f32 %v596_v5 }
 0x1e1   :  { %v957_v10 = vpop.eup %956  ;;  %v693_v21 = vmul.f32 4.0, %v955_v9  ;;  %968 = vtanh.f32 %v588_v8 }
 0x1e2   :  { %v959_v11 = vpop.eup %958  ;;  %v691_v12 = vmul.f32 4.0, %v957_v10 }
 0x1e3   :  { %v961_v13 = vpop.eup %960  ;;  %725 = vst [vmem:[%s1291_s5 + $0x70] sm:$0xff] %v693_v21  ;;  %v694_v14 = vmul.f32 4.0, %v959_v11  ;;  %v899_v15 = vpop.f32.mrb[20].mxu1 }
 0x1e4   :  { %723 = vst [vmem:[%s1291_s5 + $0x60] sm:$0xff] %v691_v12  ;;  %v692_v16 = vmul.f32 4.0, %v961_v13  ;;  %v609_v17 = vadd.f32 %v899_v15, %v1156_v7  ;;  %v600_v18 = vpop.f32.mrb[21].mxu1 }
 0x1e5   :  { %726 = vst [vmem:[%s1291_s5 + $0x78] sm:$0xff] %v694_v14  ;;  %v601_v19 = vadd.f32 %v1156_v7, %v600_v18  ;;  %v900_v20 = vpop.f32.mrb[22].mxu1 }
 0x1e6   :  { %724 = vst [vmem:[%s1291_s5 + $0x68] sm:$0xff] %v692_v16  ;;  %970 = vtanh.f32 %v609_v17  ;;  %v612_v22 = vadd.f32 %v900_v20, %v1156_v7  ;;  %v603_v23 = vpop.f32.mrb[23].mxu1 }
 0x1e7   :  { %972 = vtanh.f32 %v601_v19  ;;  %v604_v24 = vadd.f32 %v1156_v7, %v603_v23 }
 0x1e8   :  { %v963_v25 = vpop.eup %962  ;;  %974 = vtanh.f32 %v612_v22 }
 0x1e9   :  { %v965_v26 = vpop.eup %964  ;;  %v697_v27 = vmul.f32 4.0, %v963_v25  ;;  %976 = vtanh.f32 %v604_v24 }
 0x1ea   :  { %v967_v28 = vpop.eup %966  ;;  %v695_v29 = vmul.f32 4.0, %v965_v26 }
 0x1eb   :  { %v969_v30 = vpop.eup %968  ;;  %729 = vst [vmem:[%s1291_s5 + $0x90] sm:$0xff] %v697_v27  ;;  %v698_v31 = vmul.f32 4.0, %v967_v28  ;;  %v903_v32 = vpop.f32.mrb[24].mxu1 }
 0x1ec   :  { %727 = vst [vmem:[%s1291_s5 + $0x80] sm:$0xff] %v695_v29  ;;  %v696_v33 = vmul.f32 4.0, %v969_v30  ;;  %v625_v34 = vadd.f32 %v903_v32, %v1156_v7  ;;  %v616_v35 = vpop.f32.mrb[25].mxu1 }
 0x1ed   :  { %730 = vst [vmem:[%s1291_s5 + $0x98] sm:$0xff] %v698_v31  ;;  %v617_v36 = vadd.f32 %v1156_v7, %v616_v35  ;;  %v904_v37 = vpop.f32.mrb[26].mxu1 }
 0x1ee   :  { %728 = vst [vmem:[%s1291_s5 + $0x88] sm:$0xff] %v696_v33  ;;  %978 = vtanh.f32 %v625_v34  ;;  %v628_v38 = vadd.f32 %v904_v37, %v1156_v7  ;;  %v619_v39 = vpop.f32.mrb[27].mxu1 }
 0x1ef   :  { %980 = vtanh.f32 %v617_v36  ;;  %v620_v40 = vadd.f32 %v1156_v7, %v619_v39 }
 0x1f0   :  { %v971_v41 = vpop.eup %970  ;;  %982 = vtanh.f32 %v628_v38 }
 0x1f1   :  { %v973_v42 = vpop.eup %972  ;;  %v701_v43 = vmul.f32 4.0, %v971_v41  ;;  %984 = vtanh.f32 %v620_v40 }
 0x1f2   :  { %v975_v44 = vpop.eup %974  ;;  %v699_v45 = vmul.f32 4.0, %v973_v42 }
 0x1f3   :  { %v977_v46 = vpop.eup %976  ;;  %733 = vst [vmem:[%s1291_s5 + $0xb0] sm:$0xff] %v701_v43  ;;  %v702_v47 = vmul.f32 4.0, %v975_v44  ;;  %v907_v48 = vpop.f32.mrb[28].mxu1 }
 0x1f4   :  { %731 = vst [vmem:[%s1291_s5 + $0xa0] sm:$0xff] %v699_v45  ;;  %v700_v49 = vmul.f32 4.0, %v977_v46  ;;  %v641_v50 = vadd.f32 %v907_v48, %v1156_v7  ;;  %v632_v51 = vpop.f32.mrb[29].mxu1 }
 0x1f5   :  { %734 = vst [vmem:[%s1291_s5 + $0xb8] sm:$0xff] %v702_v47  ;;  %v633_v52 = vadd.f32 %v1156_v7, %v632_v51  ;;  %v908_v53 = vpop.f32.mrb[30].mxu1 }
 0x1f6   :  { %732 = vst [vmem:[%s1291_s5 + $0xa8] sm:$0xff] %v700_v49  ;;  %986 = vtanh.f32 %v641_v50  ;;  %v644_v54 = vadd.f32 %v908_v53, %v1156_v7  ;;  %v635_v55 = vpop.f32.mrb[31].mxu1 }
 0x1f7   :  { %988 = vtanh.f32 %v633_v52  ;;  %v636_v56 = vadd.f32 %v1156_v7, %v635_v55 }
 0x1f8   :  { %v979_v57 = vpop.eup %978  ;;  %990 = vtanh.f32 %v644_v54 }
 0x1f9   :  { %v981_v58 = vpop.eup %980  ;;  %v705_v59 = vmul.f32 4.0, %v979_v57  ;;  %992 = vtanh.f32 %v636_v56 }
 0x1fa   :  { %v983_v60 = vpop.eup %982  ;;  %v703_v61 = vmul.f32 4.0, %v981_v58 }
 0x1fb   :  { %v985_v62 = vpop.eup %984  ;;  %737 = vst [vmem:[%s1291_s5 + $0xd0] sm:$0xff] %v705_v59  ;;  %v706_v63 = vmul.f32 4.0, %v983_v60 }
 0x1fc   :  { %735 = vst [vmem:[%s1291_s5 + $0xc0] sm:$0xff] %v703_v61  ;;  %v704_v0 = vmul.f32 4.0, %v985_v62 }
 0x1fd   :  { %738 = vst [vmem:[%s1291_s5 + $0xd8] sm:$0xff] %v706_v63 }
 0x1fe   :  { %736 = vst [vmem:[%s1291_s5 + $0xc8] sm:$0xff] %v704_v0 }
 0x200   :  { %v987_v7 = vpop.eup %986 }
 0x201   :  { %v989_v1 = vpop.eup %988  ;;  %v709_v2 = vmul.f32 4.0, %v987_v7 }
 0x202   :  { %v991_v3 = vpop.eup %990  ;;  %v707_v4 = vmul.f32 4.0, %v989_v1 }
 0x203   :  { %v993_v5 = vpop.eup %992  ;;  %741 = vst [vmem:[%s1291_s5 + $0xf0] sm:$0xff] %v709_v2  ;;  %v710_v6 = vmul.f32 4.0, %v991_v3 }
 0x204   :  { %739 = vst [vmem:[%s1291_s5 + $0xe0] sm:$0xff] %v707_v4  ;;  %v708_v8 = vmul.f32 4.0, %v993_v5 }
 0x205   :  { %742 = vst [vmem:[%s1291_s5 + $0xf8] sm:$0xff] %v710_v6 }
 0x206   :  { %740 = vst [vmem:[%s1291_s5 + $0xe8] sm:$0xff] %v708_v8 }

</bundles_post_ra>
